<compile_context>
chip_gen: v6e
topology: v6e:2x2x1
jax: 0.10.0
libtpu: 0.0.40
codegen_flags: <defaults>
</compile_context>

<pallas_src>
import functools

import jax
import jax.numpy as jnp
from jax import lax
from jax.experimental import pallas as pl
from jax.experimental.pallas import tpu as pltpu

EPS = 1e-5
LANE = 128


def _round_up(x, m):
    return (x + m - 1) // m * m


def _pick_row_tile(H, W, max_rows=2048):
    """Largest TH dividing H with TH*W a multiple of 128 (lane-dense stores),
    preferring >=2 tiles per image so each TensorCore gets >=2 grid steps."""
    cands = [th for th in range(1, H + 1)
             if H % th == 0 and (th * W) % LANE == 0 and th * W <= max_rows]
    if not cands:
        return H                      # whole image per step (block == full dim)
    multi = [th for th in cands if H // th >= 2]
    return max(multi) if multi else max(cands)


def _pick_col_tile(HW, max_cols=8192):
    """Lane-dense HW chunk for the normalize pass, preferring >=2 chunks."""
    cands = [c for c in range(LANE, HW + 1, LANE)
             if HW % c == 0 and c <= max_cols]
    if not cands:
        return HW
    multi = [c for c in cands if HW // c >= 2]
    return max(multi) if multi else max(cands)


def _make_conv_relu_stats_kernel(TH, W, Cin, O, O_pad, KH, KW, d):
    """Pass 1: dilated KxK conv for one haloed row-tile of one image, as a single
    im2col matmul, + bias + ReLU, + per-channel (sum, sum_sq) partial BN stats."""
    THW = TH * W
    KC = KH * KW * Cin

    def kernel(x_ref, w_ref, b_ref, a_ref, stats_ref, col_ref):
        # x_ref:     (1, 1, TH+2d, W+2d, Cin) bf16  haloed NHWC row tile
        # w_ref:     (KC, O_pad)              bf16  resident weights (tap-major K)
        # b_ref:     (1, O_pad)               f32   resident bias
        # a_ref:     (1, O, THW)              f32   pre-norm activations (channel-major)
        # stats_ref: (1, 1, 2, O_pad)         f32   row0=sum, row1=sum of squares
        # col_ref:   (THW, KC)                bf16  VMEM im2col scratch (one-shot relayout)
        t = 0
        for kh in range(KH):
            for kw in range(KW):
                tap = x_ref[0, 0, kh * d:kh * d + TH, kw * d:kw * d + W, :]
                col_ref[:, t * Cin:(t + 1) * Cin] = tap.reshape(THW, Cin)
                t += 1
        # single MXU matmul, contraction dim = KH*KW*Cin, f32 accumulation
        acc = jnp.dot(col_ref[...], w_ref[...],
                      preferred_element_type=jnp.float32)        # (THW, O_pad)
        a = jnp.maximum(acc + b_ref[...], 0.0)                   # bias + ReLU, f32
        s = jnp.sum(a, axis=0, keepdims=True)                    # (1, O_pad)
        ss = jnp.sum(a * a, axis=0, keepdims=True)                # (1, O_pad)
        stats_ref[0, 0] = jnp.concatenate([s, ss], axis=0)
        # XLU transpose then store only the real O channels -> no channel-padding
        # inflation of the intermediate, and pass 2 can emit NCHW directly.
        a_ref[0] = jnp.transpose(a)[:O, :]                       # (O, THW)

    return kernel


def _normalize_kernel(a_ref, scale_ref, shift_ref, o_ref):
    # Pass 2: y = a * scale + shift (scale/shift fold gamma, batch mean/var, beta)
    o_ref[0] = a_ref[0] * scale_ref[...] + shift_ref[...]


@functools.partial(jax.jit, static_argnames=("dilation",))
def dilated_conv_forward(x, w, b, gamma, beta, *, dilation=1):
    """x: (N, Cin, H, W) f32; w: (O, Cin, 3, 3); b/gamma/beta: (O,) -> (N, O, H, W)."""
    N, Cin, H, W = x.shape
    O, _, KH, KW = w.shape
    d = int(dilation)
    KK = KH * KW
    KC = KK * Cin
    HW = H * W
    Wp = W + 2 * d
    # NOTE: if O ever reaches >=128, pad to a multiple of 256 to fill the
    # v6e/v7x MXU N dim; for small O the padding only affects the matmul tile,
    # never the stored intermediate (which uses the real O).
    O_pad = _round_up(O, LANE)

    TH = _pick_row_tile(H, W)
    nH = H // TH
    THp = TH + 2 * d
    THW = TH * W

    # ---- layout prep: NCHW->NHWC bf16, zero-pad spatial, pre-slice overlapping
    # haloed row tiles so the grid never needs overlapping BlockSpec windows.
    # (No 9x im2col in HBM; halo duplication is only (TH+2d)/TH on a bf16 input.)
    xp = jnp.pad(jnp.transpose(x, (0, 2, 3, 1)).astype(jnp.bfloat16),
                 ((0, 0), (d, d), (d, d), (0, 0)))               # (N, Hp, Wp, Cin)
    x_tiles = jnp.stack([xp[:, t * TH:t * TH + THp] for t in range(nH)],
                        axis=1)                                  # (N, nH, THp, Wp, Cin)

    # weights: (O,Cin,KH,KW) -> (KH,KW,Cin,O) -> (KC, O_pad); row index
    # (kh*KW+kw)*Cin + cin matches the in-kernel im2col column ordering.
    wt = jnp.transpose(w, (2, 3, 1, 0)).reshape(KC, O)
    wt = jnp.pad(wt, ((0, 0), (0, O_pad - O))).astype(jnp.bfloat16)
    b2 = jnp.pad(b.astype(jnp.float32), (0, O_pad - O)).reshape(1, O_pad)

    # ---- pass 1: conv + bias + ReLU + per-tile BN partial sums ---------------
    flops1 = 2 * N * HW * KC * O                     # real O (advisory estimate)
    bytes1 = (x_tiles.size * 2 + wt.size * 2 + b2.size * 4
              + N * O * HW * 4 + N * nH * 2 * O_pad * 4)
    a_flat, stats = pl.pallas_call(
        _make_conv_relu_stats_kernel(TH, W, Cin, O, O_pad, KH, KW, d),
        out_shape=(jax.ShapeDtypeStruct((N, O, HW), jnp.float32),
                   jax.ShapeDtypeStruct((N, nH, 2, O_pad), jnp.float32)),
        grid=(N, nH),
        in_specs=[
            pl.BlockSpec((1, 1, THp, Wp, Cin), lambda n, h: (n, h, 0, 0, 0)),
            pl.BlockSpec((KC, O_pad), lambda n, h: (0, 0)),
            pl.BlockSpec((1, O_pad), lambda n, h: (0, 0)),
        ],
        out_specs=(
            pl.BlockSpec((1, O, THW), lambda n, h: (n, 0, h)),
            pl.BlockSpec((1, 1, 2, O_pad), lambda n, h: (n, h, 0, 0)),
        ),
        scratch_shapes=[pltpu.VMEM((THW, KC), jnp.bfloat16)],
        compiler_params=pltpu.CompilerParams(
            dimension_semantics=("parallel", "parallel")),
        cost_estimate=pl.CostEstimate(
            flops=flops1, transcendentals=0, bytes_accessed=bytes1),
    )(x_tiles, wt, b2)

    # ---- finalize BN stats: tiny per-channel math (plain JAX) ----------------
    count = jnp.float32(N * HW)
    s_sum = jnp.sum(stats[:, :, 0, :O], axis=(0, 1))
    ss_sum = jnp.sum(stats[:, :, 1, :O], axis=(0, 1))
    mean = s_sum / count
    var = jnp.maximum(ss_sum / count - mean * mean, 0.0)
    # TODO(synk): for very large N*H*W, switch to a Welford-style combine here;
    # E[x^2]-mean^2 in f32 can cancel badly for post-ReLU activations.
    inv = lax.rsqrt(var + EPS)
    g = gamma.astype(jnp.float32)
    scale = (g * inv).reshape(O, 1)
    shift = (beta.astype(jnp.float32) - mean * g * inv).reshape(O, 1)

    # ---- pass 2: lane-dense elementwise normalize, aliased in-place ----------
    HWB = _pick_col_tile(HW)
    flops2 = 2 * N * O * HW
    bytes2 = 2 * N * O * HW * 4 + 2 * O * 4
    y_flat = pl.pallas_call(
        _normalize_kernel,
        out_shape=jax.ShapeDtypeStruct((N, O, HW), jnp.float32),
        grid=(N, HW // HWB),
        in_specs=[
            pl.BlockSpec((1, O, HWB), lambda n, c: (n, 0, c)),
            pl.BlockSpec((O, 1), lambda n, c: (0, 0)),
            pl.BlockSpec((O, 1), lambda n, c: (0, 0)),
        ],
        out_specs=pl.BlockSpec((1, O, HWB), lambda n, c: (n, 0, c)),
        input_output_aliases={0: 0},
        compiler_params=pltpu.CompilerParams(
            dimension_semantics=("parallel", "parallel")),
        cost_estimate=pl.CostEstimate(
            flops=flops2, transcendentals=0, bytes_accessed=bytes2),
    )(a_flat, scale, shift)

    # channel-major (N, O, H*W) -> NCHW is a contiguous reshape (no transpose).
    # TODO(synk): Dropout2d is identity for dropout_rate=0 (module default);
    # BatchNorm running-stat update is a training side effect, not an output.
    return y_flat.reshape(N, O, H, W)


def _reference(x, w, b, gamma, beta, dilation, conv_dtype=jnp.float32):
    d = dilation
    conv = lax.conv_general_dilated(
        x.astype(conv_dtype), w.astype(conv_dtype),
        window_strides=(1, 1), padding=[(d, d), (d, d)],
        rhs_dilation=(d, d), dimension_numbers=("NCHW", "OIHW", "NCHW"),
        preferred_element_type=jnp.float32,
    ) + b.reshape(1, -1, 1, 1)
    a = jnp.maximum(conv, 0.0)
    mean = a.mean(axis=(0, 2, 3), keepdims=True)
    var = ((a - mean) ** 2).mean(axis=(0, 2, 3), keepdims=True)
    return (gamma.reshape(1, -1, 1, 1) * (a - mean) * lax.rsqrt(var + EPS)
            + beta.reshape(1, -1, 1, 1))


if __name__ == "__main__":
    key = jax.random.PRNGKey(0)
    k_x, k_w, k_b, k_g, k_beta = jax.random.split(key, 5)

    N, Cin, H, W = 2, 4, 16, 16
    Cout, K, dilation = 8, 3, 2

    x = jax.random.normal(k_x, (N, Cin, H, W), dtype=jnp.float32)
    w = jax.random.normal(k_w, (Cout, Cin, K, K), dtype=jnp.float32) * 0.1
    b = jax.random.normal(k_b, (Cout,), dtype=jnp.float32) * 0.1
    gamma = 1.0 + 0.1 * jax.random.normal(k_g, (Cout,), dtype=jnp.float32)
    beta = 0.1 * jax.random.normal(k_beta, (Cout,), dtype=jnp.float32)

    y = dilated_conv_forward(x, w, b, gamma, beta, dilation=dilation)
    jax.block_until_ready(y)
    assert y.shape == (N, Cout, H, W)

    # strict check vs a reference fed the same bf16-quantized conv operands
    y_ref_bf16 = _reference(x, w, b, gamma, beta, dilation,
                            conv_dtype=jnp.bfloat16)
    err_bf16 = float(jnp.max(jnp.abs(y - y_ref_bf16)))
    # sanity check vs the pure-f32 reference (bounds bf16 operand quantization)
    y_ref_f32 = _reference(x, w, b, gamma, beta, dilation,
                           conv_dtype=jnp.float32)
    err_f32 = float(jnp.max(jnp.abs(y - y_ref_f32)))

    assert err_bf16 < 5e-3, f"mismatch vs bf16-operand reference: {err_bf16}"
    assert err_f32 < 5e-2, f"mismatch vs f32 reference: {err_f32}"

    print("KERNEL_OK")
</pallas_src>

<mosaic_0001>
module attributes {stable_mosaic.version = 11 : i64} {
  func.func @kernel(%arg0: i32, %arg1: i32, %arg2: memref<1x1x12x20x4xbf16, #tpu.memory_space<vmem>>, %arg3: memref<36x128xbf16, #tpu.memory_space<vmem>>, %arg4: memref<1x128xf32, #tpu.memory_space<vmem>>, %arg5: memref<1x8x128xf32, #tpu.memory_space<vmem>>, %arg6: memref<1x1x2x128xf32, #tpu.memory_space<vmem>>, %arg7: memref<128x36xbf16, #tpu.memory_space<vmem>>) attributes {dimension_semantics = [#tpu.dimension_semantics<parallel>, #tpu.dimension_semantics<parallel>], iteration_bounds = array<i64: 2, 2>, scalar_prefetch = 0 : i64, scratch_operands = 1 : i64, tpu.core_type = #tpu.core_type<tc>, window_params = [{transform_indices = @transform_0, window_bounds = array<i64: 1, 1, 12, 20, 4>}, {pipeline_mode = #tpu.pipeline_mode<synchronous>, transform_indices = @transform_1, window_bounds = array<i64: 36, 128>}, {pipeline_mode = #tpu.pipeline_mode<synchronous>, transform_indices = @transform_2, window_bounds = array<i64: 1, 128>}, {transform_indices = @transform_3, window_bounds = array<i64: 1, 8, 128>}, {transform_indices = @transform_4, window_bounds = array<i64: 1, 1, 2, 128>}]} {
    %c0 = arith.constant 0 : index
    %c0_0 = arith.constant 0 : index
    %c0_1 = arith.constant 0 : index
    %c0_2 = arith.constant 0 : index
    %c0_3 = arith.constant 0 : index
    %0 = vector.load %arg2[%c0, %c0_0, %c0_1, %c0_2, %c0_3] : memref<1x1x12x20x4xbf16, #tpu.memory_space<vmem>>, vector<1x1x8x16x4xbf16>
    %1 = vector.shape_cast %0 : vector<1x1x8x16x4xbf16> to vector<8x16x4xbf16>
    %2 = vector.shape_cast %1 : vector<8x16x4xbf16> to vector<128x4xbf16>
    %c0_4 = arith.constant 0 : index
    %c0_5 = arith.constant 0 : index
    %3 = vector.load %arg7[%c0_4, %c0_5] : memref<128x36xbf16, #tpu.memory_space<vmem>>, vector<128x4xbf16>
    tpu.vector_store %arg7[%c0_4, %c0_5], %2 {strides = array<i32>} : memref<128x36xbf16, #tpu.memory_space<vmem>>, vector<128x4xbf16>,
    %c0_6 = arith.constant 0 : index
    %c0_7 = arith.constant 0 : index
    %c0_8 = arith.constant 0 : index
    %c2 = arith.constant 2 : index
    %c0_9 = arith.constant 0 : index
    %4 = vector.load %arg2[%c0_6, %c0_7, %c0_8, %c2, %c0_9] : memref<1x1x12x20x4xbf16, #tpu.memory_space<vmem>>, vector<1x1x8x16x4xbf16>
    %5 = vector.shape_cast %4 : vector<1x1x8x16x4xbf16> to vector<8x16x4xbf16>
    %6 = vector.shape_cast %5 : vector<8x16x4xbf16> to vector<128x4xbf16>
    %c0_10 = arith.constant 0 : index
    %c4 = arith.constant 4 : index
    %7 = vector.load %arg7[%c0_10, %c4] : memref<128x36xbf16, #tpu.memory_space<vmem>>, vector<128x4xbf16>
    tpu.vector_store %arg7[%c0_10, %c4], %6 {strides = array<i32>} : memref<128x36xbf16, #tpu.memory_space<vmem>>, vector<128x4xbf16>,
    %c0_11 = arith.constant 0 : index
    %c0_12 = arith.constant 0 : index
    %c0_13 = arith.constant 0 : index
    %c4_14 = arith.constant 4 : index
    %c0_15 = arith.constant 0 : index
    %8 = vector.load %arg2[%c0_11, %c0_12, %c0_13, %c4_14, %c0_15] : memref<1x1x12x20x4xbf16, #tpu.memory_space<vmem>>, vector<1x1x8x16x4xbf16>
    %9 = vector.shape_cast %8 : vector<1x1x8x16x4xbf16> to vector<8x16x4xbf16>
    %10 = vector.shape_cast %9 : vector<8x16x4xbf16> to vector<128x4xbf16>
    %c0_16 = arith.constant 0 : index
    %c8 = arith.constant 8 : index
    %11 = vector.load %arg7[%c0_16, %c8] : memref<128x36xbf16, #tpu.memory_space<vmem>>, vector<128x4xbf16>
    tpu.vector_store %arg7[%c0_16, %c8], %10 {strides = array<i32>} : memref<128x36xbf16, #tpu.memory_space<vmem>>, vector<128x4xbf16>,
    %c0_17 = arith.constant 0 : index
    %c0_18 = arith.constant 0 : index
    %c2_19 = arith.constant 2 : index
    %c0_20 = arith.constant 0 : index
    %c0_21 = arith.constant 0 : index
    %12 = vector.load %arg2[%c0_17, %c0_18, %c2_19, %c0_20, %c0_21] : memref<1x1x12x20x4xbf16, #tpu.memory_space<vmem>>, vector<1x1x8x16x4xbf16>
    %13 = vector.shape_cast %12 : vector<1x1x8x16x4xbf16> to vector<8x16x4xbf16>
    %14 = vector.shape_cast %13 : vector<8x16x4xbf16> to vector<128x4xbf16>
    %c0_22 = arith.constant 0 : index
    %c12 = arith.constant 12 : index
    %15 = vector.load %arg7[%c0_22, %c12] : memref<128x36xbf16, #tpu.memory_space<vmem>>, vector<128x4xbf16>
    tpu.vector_store %arg7[%c0_22, %c12], %14 {strides = array<i32>} : memref<128x36xbf16, #tpu.memory_space<vmem>>, vector<128x4xbf16>,
    %c0_23 = arith.constant 0 : index
    %c0_24 = arith.constant 0 : index
    %c2_25 = arith.constant 2 : index
    %c2_26 = arith.constant 2 : index
    %c0_27 = arith.constant 0 : index
    %16 = vector.load %arg2[%c0_23, %c0_24, %c2_25, %c2_26, %c0_27] : memref<1x1x12x20x4xbf16, #tpu.memory_space<vmem>>, vector<1x1x8x16x4xbf16>
    %17 = vector.shape_cast %16 : vector<1x1x8x16x4xbf16> to vector<8x16x4xbf16>
    %18 = vector.shape_cast %17 : vector<8x16x4xbf16> to vector<128x4xbf16>
    %c0_28 = arith.constant 0 : index
    %c16 = arith.constant 16 : index
    %19 = vector.load %arg7[%c0_28, %c16] : memref<128x36xbf16, #tpu.memory_space<vmem>>, vector<128x4xbf16>
    tpu.vector_store %arg7[%c0_28, %c16], %18 {strides = array<i32>} : memref<128x36xbf16, #tpu.memory_space<vmem>>, vector<128x4xbf16>,
    %c0_29 = arith.constant 0 : index
    %c0_30 = arith.constant 0 : index
    %c2_31 = arith.constant 2 : index
    %c4_32 = arith.constant 4 : index
    %c0_33 = arith.constant 0 : index
    %20 = vector.load %arg2[%c0_29, %c0_30, %c2_31, %c4_32, %c0_33] : memref<1x1x12x20x4xbf16, #tpu.memory_space<vmem>>, vector<1x1x8x16x4xbf16>
    %21 = vector.shape_cast %20 : vector<1x1x8x16x4xbf16> to vector<8x16x4xbf16>
    %22 = vector.shape_cast %21 : vector<8x16x4xbf16> to vector<128x4xbf16>
    %c0_34 = arith.constant 0 : index
    %c20 = arith.constant 20 : index
    %23 = vector.load %arg7[%c0_34, %c20] : memref<128x36xbf16, #tpu.memory_space<vmem>>, vector<128x4xbf16>
    tpu.vector_store %arg7[%c0_34, %c20], %22 {strides = array<i32>} : memref<128x36xbf16, #tpu.memory_space<vmem>>, vector<128x4xbf16>,
    %c0_35 = arith.constant 0 : index
    %c0_36 = arith.constant 0 : index
    %c4_37 = arith.constant 4 : index
    %c0_38 = arith.constant 0 : index
    %c0_39 = arith.constant 0 : index
    %24 = vector.load %arg2[%c0_35, %c0_36, %c4_37, %c0_38, %c0_39] : memref<1x1x12x20x4xbf16, #tpu.memory_space<vmem>>, vector<1x1x8x16x4xbf16>
    %25 = vector.shape_cast %24 : vector<1x1x8x16x4xbf16> to vector<8x16x4xbf16>
    %26 = vector.shape_cast %25 : vector<8x16x4xbf16> to vector<128x4xbf16>
    %c0_40 = arith.constant 0 : index
    %c24 = arith.constant 24 : index
    %27 = vector.load %arg7[%c0_40, %c24] : memref<128x36xbf16, #tpu.memory_space<vmem>>, vector<128x4xbf16>
    tpu.vector_store %arg7[%c0_40, %c24], %26 {strides = array<i32>} : memref<128x36xbf16, #tpu.memory_space<vmem>>, vector<128x4xbf16>,
    %c0_41 = arith.constant 0 : index
    %c0_42 = arith.constant 0 : index
    %c4_43 = arith.constant 4 : index
    %c2_44 = arith.constant 2 : index
    %c0_45 = arith.constant 0 : index
    %28 = vector.load %arg2[%c0_41, %c0_42, %c4_43, %c2_44, %c0_45] : memref<1x1x12x20x4xbf16, #tpu.memory_space<vmem>>, vector<1x1x8x16x4xbf16>
    %29 = vector.shape_cast %28 : vector<1x1x8x16x4xbf16> to vector<8x16x4xbf16>
    %30 = vector.shape_cast %29 : vector<8x16x4xbf16> to vector<128x4xbf16>
    %c0_46 = arith.constant 0 : index
    %c28 = arith.constant 28 : index
    %31 = vector.load %arg7[%c0_46, %c28] : memref<128x36xbf16, #tpu.memory_space<vmem>>, vector<128x4xbf16>
    tpu.vector_store %arg7[%c0_46, %c28], %30 {strides = array<i32>} : memref<128x36xbf16, #tpu.memory_space<vmem>>, vector<128x4xbf16>,
    %c0_47 = arith.constant 0 : index
    %c0_48 = arith.constant 0 : index
    %c4_49 = arith.constant 4 : index
    %c4_50 = arith.constant 4 : index
    %c0_51 = arith.constant 0 : index
    %32 = vector.load %arg2[%c0_47, %c0_48, %c4_49, %c4_50, %c0_51] : memref<1x1x12x20x4xbf16, #tpu.memory_space<vmem>>, vector<1x1x8x16x4xbf16>
    %33 = vector.shape_cast %32 : vector<1x1x8x16x4xbf16> to vector<8x16x4xbf16>
    %34 = vector.shape_cast %33 : vector<8x16x4xbf16> to vector<128x4xbf16>
    %c0_52 = arith.constant 0 : index
    %c32 = arith.constant 32 : index
    %35 = vector.load %arg7[%c0_52, %c32] : memref<128x36xbf16, #tpu.memory_space<vmem>>, vector<128x4xbf16>
    tpu.vector_store %arg7[%c0_52, %c32], %34 {strides = array<i32>} : memref<128x36xbf16, #tpu.memory_space<vmem>>, vector<128x4xbf16>,
    %c0_53 = arith.constant 0 : index
    %c0_54 = arith.constant 0 : index
    %36 = vector.load %arg7[%c0_53, %c0_54] : memref<128x36xbf16, #tpu.memory_space<vmem>>, vector<128x36xbf16>
    %c0_55 = arith.constant 0 : index
    %c0_56 = arith.constant 0 : index
    %37 = vector.load %arg3[%c0_55, %c0_56] : memref<36x128xbf16, #tpu.memory_space<vmem>>, vector<36x128xbf16>
    %cst = arith.constant dense<0.000000e+00> : vector<128x128xf32>
    %38 = tpu.matmul %36, %37, %cst {dimension_numbers = #tpu.dot_dimension_numbers<[1], [0], [0], [1], [0, 0, 1, 1], [], []>} : vector<128x36xbf16>, vector<36x128xbf16>, vector<128x128xf32> -> vector<128x128xf32>
    %c0_57 = arith.constant 0 : index
    %c0_58 = arith.constant 0 : index
    %39 = vector.load %arg4[%c0_57, %c0_58] : memref<1x128xf32, #tpu.memory_space<vmem>>, vector<1x128xf32>
    %40 = vector.broadcast %39 : vector<1x128xf32> to vector<128x128xf32>
    %41 = arith.addf %38, %40 : vector<128x128xf32>
    %cst_59 = arith.constant 0.000000e+00 : f32
    %42 = vector.broadcast %cst_59 : f32 to vector<128x128xf32>
    %43 = arith.maximumf %41, %42 : vector<128x128xf32>
    %cst_60 = arith.constant dense<0.000000e+00> : vector<128xf32>
    %44 = vector.multi_reduction <add>, %43, %cst_60 [0] : vector<128x128xf32> to vector<128xf32>
    %45 = vector.shape_cast %44 : vector<128xf32> to vector<1x128xf32>
    %46 = arith.mulf %43, %43 : vector<128x128xf32>
    %cst_61 = arith.constant dense<0.000000e+00> : vector<128xf32>
    %47 = vector.multi_reduction <add>, %46, %cst_61 [0] : vector<128x128xf32> to vector<128xf32>
    %48 = vector.shape_cast %47 : vector<128xf32> to vector<1x128xf32>
    %49 = tpu.concatenate %45, %48 in 0 : vector<1x128xf32>, vector<1x128xf32> -> vector<2x128xf32>
    %c0_62 = arith.constant 0 : index
    %c0_63 = arith.constant 0 : index
    %c0_64 = arith.constant 0 : index
    %c0_65 = arith.constant 0 : index
    %50 = vector.load %arg6[%c0_62, %c0_63, %c0_64, %c0_65] : memref<1x1x2x128xf32, #tpu.memory_space<vmem>>, vector<1x1x2x128xf32>
    %51 = vector.shape_cast %50 : vector<1x1x2x128xf32> to vector<2x128xf32>
    %52 = vector.shape_cast %49 : vector<2x128xf32> to vector<1x1x2x128xf32>
    tpu.vector_store %arg6[%c0_62, %c0_63, %c0_64, %c0_65], %52 {strides = array<i32>} : memref<1x1x2x128xf32, #tpu.memory_space<vmem>>, vector<1x1x2x128xf32>,
    %53 = tpu.transpose %43, [1, 0] : vector<128x128xf32> -> vector<128x128xf32>
    %54 = vector.extract_strided_slice %53 {offsets = [0, 0], sizes = [8, 128], strides = [1, 1]} : vector<128x128xf32> to vector<8x128xf32>
    %c0_66 = arith.constant 0 : index
    %c0_67 = arith.constant 0 : index
    %c0_68 = arith.constant 0 : index
    %55 = vector.load %arg5[%c0_66, %c0_67, %c0_68] : memref<1x8x128xf32, #tpu.memory_space<vmem>>, vector<1x8x128xf32>
    %56 = vector.shape_cast %55 : vector<1x8x128xf32> to vector<8x128xf32>
    %57 = vector.shape_cast %54 : vector<8x128xf32> to vector<1x8x128xf32>
    tpu.vector_store %arg5[%c0_66, %c0_67, %c0_68], %57 {strides = array<i32>} : memref<1x8x128xf32, #tpu.memory_space<vmem>>, vector<1x8x128xf32>,
    return
  }
  func.func @transform_0(%arg0: i32, %arg1: i32) -> (i32, i32, i32, i32, i32) {
    %c0_i32 = arith.constant 0 : i32
    %c0_i32_0 = arith.constant 0 : i32
    %c0_i32_1 = arith.constant 0 : i32
    %c0_i32_2 = arith.constant 0 : i32
    return %arg0, %arg1, %c0_i32, %c0_i32_0, %c0_i32_1 : i32, i32, i32, i32, i32
  }
  func.func @transform_1(%arg0: i32, %arg1: i32) -> (i32, i32) {
    %c0_i32 = arith.constant 0 : i32
    %c0_i32_0 = arith.constant 0 : i32
    %c0_i32_1 = arith.constant 0 : i32
    return %c0_i32, %c0_i32_0 : i32, i32
  }
  func.func @transform_2(%arg0: i32, %arg1: i32) -> (i32, i32) {
    %c0_i32 = arith.constant 0 : i32
    %c0_i32_0 = arith.constant 0 : i32
    %c0_i32_1 = arith.constant 0 : i32
    return %c0_i32, %c0_i32_0 : i32, i32
  }
  func.func @transform_3(%arg0: i32, %arg1: i32) -> (i32, i32, i32) {
    %c0_i32 = arith.constant 0 : i32
    %c0_i32_0 = arith.constant 0 : i32
    return %arg0, %c0_i32, %arg1 : i32, i32, i32
  }
  func.func @transform_4(%arg0: i32, %arg1: i32) -> (i32, i32, i32, i32) {
    %c0_i32 = arith.constant 0 : i32
    %c0_i32_0 = arith.constant 0 : i32
    %c0_i32_1 = arith.constant 0 : i32
    return %arg0, %arg1, %c0_i32, %c0_i32_0 : i32, i32, i32, i32
  }
}

module attributes {stable_mosaic.version = 11 : i64} {
  func.func @_normalize_kernel(%arg0: i32, %arg1: i32, %arg2: memref<1x8x128xf32, #tpu.memory_space<vmem>>, %arg3: memref<8x1xf32, #tpu.memory_space<vmem>>, %arg4: memref<8x1xf32, #tpu.memory_space<vmem>>, %arg5: memref<1x8x128xf32, #tpu.memory_space<vmem>>) attributes {dimension_semantics = [#tpu.dimension_semantics<parallel>, #tpu.dimension_semantics<parallel>], iteration_bounds = array<i64: 2, 2>, scalar_prefetch = 0 : i64, scratch_operands = 0 : i64, tpu.core_type = #tpu.core_type<tc>, window_params = [{transform_indices = @transform_0, window_bounds = array<i64: 1, 8, 128>}, {pipeline_mode = #tpu.pipeline_mode<synchronous>, transform_indices = @transform_1, window_bounds = array<i64: 8, 1>}, {pipeline_mode = #tpu.pipeline_mode<synchronous>, transform_indices = @transform_2, window_bounds = array<i64: 8, 1>}, {transform_indices = @transform_3, window_bounds = array<i64: 1, 8, 128>}]} {
    %c0 = arith.constant 0 : index
    %c0_0 = arith.constant 0 : index
    %c0_1 = arith.constant 0 : index
    %0 = vector.load %arg2[%c0, %c0_0, %c0_1] : memref<1x8x128xf32, #tpu.memory_space<vmem>>, vector<1x8x128xf32>
    %1 = vector.shape_cast %0 : vector<1x8x128xf32> to vector<8x128xf32>
    %c0_2 = arith.constant 0 : index
    %c0_3 = arith.constant 0 : index
    %2 = vector.load %arg3[%c0_2, %c0_3] : memref<8x1xf32, #tpu.memory_space<vmem>>, vector<8x1xf32>
    %3 = vector.broadcast %2 : vector<8x1xf32> to vector<8x128xf32>
    %4 = arith.mulf %1, %3 : vector<8x128xf32>
    %c0_4 = arith.constant 0 : index
    %c0_5 = arith.constant 0 : index
    %5 = vector.load %arg4[%c0_4, %c0_5] : memref<8x1xf32, #tpu.memory_space<vmem>>, vector<8x1xf32>
    %6 = vector.broadcast %5 : vector<8x1xf32> to vector<8x128xf32>
    %7 = arith.addf %4, %6 : vector<8x128xf32>
    %c0_6 = arith.constant 0 : index
    %c0_7 = arith.constant 0 : index
    %c0_8 = arith.constant 0 : index
    %8 = vector.load %arg5[%c0_6, %c0_7, %c0_8] : memref<1x8x128xf32, #tpu.memory_space<vmem>>, vector<1x8x128xf32>
    %9 = vector.shape_cast %8 : vector<1x8x128xf32> to vector<8x128xf32>
    %10 = vector.shape_cast %7 : vector<8x128xf32> to vector<1x8x128xf32>
    tpu.vector_store %arg5[%c0_6, %c0_7, %c0_8], %10 {strides = array<i32>} : memref<1x8x128xf32, #tpu.memory_space<vmem>>, vector<1x8x128xf32>,
    return
  }
  func.func @transform_0(%arg0: i32, %arg1: i32) -> (i32, i32, i32) {
    %c0_i32 = arith.constant 0 : i32
    %c0_i32_0 = arith.constant 0 : i32
    return %arg0, %c0_i32, %arg1 : i32, i32, i32
  }
  func.func @transform_1(%arg0: i32, %arg1: i32) -> (i32, i32) {
    %c0_i32 = arith.constant 0 : i32
    %c0_i32_0 = arith.constant 0 : i32
    %c0_i32_1 = arith.constant 0 : i32
    return %c0_i32, %c0_i32_0 : i32, i32
  }
  func.func @transform_2(%arg0: i32, %arg1: i32) -> (i32, i32) {
    %c0_i32 = arith.constant 0 : i32
    %c0_i32_0 = arith.constant 0 : i32
    %c0_i32_1 = arith.constant 0 : i32
    return %c0_i32, %c0_i32_0 : i32, i32
  }
  func.func @transform_3(%arg0: i32, %arg1: i32) -> (i32, i32, i32) {
    %c0_i32 = arith.constant 0 : i32
    %c0_i32_0 = arith.constant 0 : i32
    return %arg0, %c0_i32, %arg1 : i32, i32, i32
  }
}

</mosaic_0001>

<bundles_post_ra>
// kernel: dilated_conv_forward.3
= control target key start
LH: loop header
LB: loop body
LE: loop exit
PB: predicated region body
PF: predicated region fallthrough
CT: control target
= control target key end

     0   :  { %s418_s12 = smov 0   ;;  %s420_s13 = smov 0   ;;  %s472_s0 = inlined_call_operand.vmem [shape: f32[2,8,256], index: 0, kind: input, shape index: {}, may-alias: {0,3}]   ;;  %s473_s1 = inlined_call_operand.vmem [shape: f32[8,1], index: 1, kind: input, shape index: {}]   ;;  %s474_s2 = inlined_call_operand.vmem [shape: f32[8,1], index: 2, kind: input, shape index: {}]   ;;  %s475_s3 = inlined_call_operand.vmem [shape: f32[2,8,256], index: 3, kind: output, shape index: {}, may-alias: {0,3}]  }
   0x1   :  { %s422_s14 = smov 0   ;;  %s424_s15 = smov 0  }
   0x2   :  { %s426_s16 = smov 0  }
   0x3 LB: > { %s22_s17 = sadd.s32 1, %s387_s14  ;;  %s25_s18 = sadd.s32 1, %s391_s15  ;;  %s395_s16 = sphi %s426_s16, %s13_s16   ;;  %s391_s15 = sphi %s424_s15, %s479_s15   ;;  %s387_s14 = sphi %s422_s14, %s478_s14   ;;  %s383_s13 = sphi %s420_s13, %s477_s13   ;;  %s379_s12 = sphi %s418_s12, %s476_s12  }
   0x4   : > { %p23_p0 = scmp.ge.s32.totalorder %s22_s17, 2  ;;  %p308_p1 = scmp.ge.s32.totalorder %s395_s16, 1 }
   0x5   : > { %p156_p2 = scmp.lt.s32.totalorder %s395_s16, 5 }
   0x6   : > { %s481_s17 = smov (%p23_p0, %s22_s17), 0  ;;  %s483_s18 = smov (!%p23_p0, %s25_s18), %s391_s15 }
   0x7   : > { %p157_p3 = pnand %p308_p1, %p156_p2  ;;  %p27_p4 = scmp.ge.s32.totalorder %s483_s18, 2 }
   0x8   : > { %p186_p5 = scmp.lt.s32.totalorder (!%p157_p3), %s383_s13, 1  ;;  %p188_p6 = scmp.lt.s32.totalorder (!%p157_p3), %s379_s12, 1 }
   0x9   : > { %s485_s18 = smov (%p27_p4, %s483_s18), 0  ;;  %160 = sbr.rel (%p157_p3) target bundleno = 147 (0x93), region = 32 }
   0xe   : > { %v203_v0 = vld [vmem:[%s473_s1] sm:$0xff]  ;;  %v397_v1 = vmov 0   ;;  %s487_s13 = smov (!%p186_p5, %s383_s13), 1  ;;  %s489_s12 = smov (!%p188_p6, %s379_s12), 1 }
   0xf   : > { %356 = vset.pattern.permute.xlu0 %v397_v1  ;;  %v210_v2 = vld [vmem:[%s474_s2] sm:$0xff]  ;;  %s309_s23 = sshll.u32 %s487_s13, 1 }
  0x10   : > { %206 = vperm.xlu0 %356, %v203_v0   ;;  %s191_s24 = sadd.s32 %s309_s23, %s489_s12 }
  0x11   : > { %s310_s25 = sshll.u32 %s191_s24, 3 }
  0x12   : > { %s193_s28 = scalar_lea.vmem %s472_s0, %s310_s25  ;;  %s201_s4 = scalar_lea.vmem %s475_s3, %s310_s25 }
  0x13   : > { %v202_v4 = vld [vmem:[%s193_s28] sm:$0xff] }
  0x14   : > { %213 = vperm.xlu0 %356, %v210_v2  }
  0x8b   : > { %v207_v3 = vpop.permute.xlu0 %206 }
  0x8c   : > { %v209_v5 = vmul.f32 %v207_v3, %v202_v4 }
  0x8f   : > { %v214_v6 = vpop.permute.xlu0 %213 }
  0x90   : > { %v216_v7 = vadd.f32 %v214_v6, %v209_v5 }
  0x92   : > { %217 = vst [vmem:[%s201_s4] sm:$0xff] %v216_v7 }
  0x93 PF: > { %s13_s16 = sadd.s32 1, %s395_s16   ;;  %s476_s12 = smov %s387_s14 }
  0x94   : > { %p10_p7 = scmp.ge.s32.totalorder %s13_s16, 6   ;;  %s477_s13 = smov %s391_s15 }
  0x95   : > { %s478_s14 = smov %s481_s17  ;;  %s479_s15 = smov %s485_s18 }
  0x96   :  { %12 = sbr.rel (!%p10_p7) target bundleno = 3 (0x3), region = 62 }

// kernel: dilated_conv_forward.2
= control target key start
LH: loop header
LB: loop body
LE: loop exit
PB: predicated region body
PF: predicated region fallthrough
CT: control target
= control target key end

     0   :  { %s2341_s15 = smov 0   ;;  %s2343_s16 = smov 0   ;;  %s3112_s0 = inlined_call_operand.vmem [shape: bf16[2,2,12,20,4], index: 0, kind: input, shape index: {}]   ;;  %s3113_s1 = inlined_call_operand.vmem [shape: bf16[36,128], index: 1, kind: input, shape index: {}]   ;;  %s3114_s2 = inlined_call_operand.vmem [shape: f32[1,128], index: 2, kind: input, shape index: {}]   ;;  %s3115_s3 = inlined_call_operand.vmem [shape: f32[2,8,256], index: 3, kind: output, shape index: {0}]   ;;  %s3116_s4 = inlined_call_operand.vmem [shape: f32[2,2,2,128], index: 4, kind: output, shape index: {1}]  }
   0x1   :  { %s2345_s17 = smov 0   ;;  %s2347_s18 = smov 0  }
   0x2   :  { %s2349_s19 = smov 0  }
   0x3 LB: > { %s24_s20 = sadd.s32 1, %s2298_s17  ;;  %s27_s21 = sadd.s32 1, %s2302_s18  ;;  %s2306_s19 = sphi %s2349_s19, %s15_s19   ;;  %s2302_s18 = sphi %s2347_s18, %s3124_s18   ;;  %s2298_s17 = sphi %s2345_s17, %s3123_s17   ;;  %s2294_s16 = sphi %s2343_s16, %s3122_s16   ;;  %s2290_s15 = sphi %s2341_s15, %s3121_s15  }
   0x4   : > { %p25_p0 = scmp.ge.s32.totalorder %s24_s20, 2  ;;  %p1962_p1 = scmp.ge.s32.totalorder %s2306_s19, 1 }
   0x5   : > { %p187_p2 = scmp.lt.s32.totalorder %s2306_s19, 5 }
   0x6   : > { %s3126_s20 = smov (%p25_p0, %s24_s20), 0  ;;  %s3128_s21 = smov (!%p25_p0, %s27_s21), %s2302_s18 }
   0x7   : > { %p188_p3 = pnand %p1962_p1, %p187_p2  ;;  %p29_p4 = scmp.ge.s32.totalorder %s3128_s21, 2 }
   0x8   : > { %p228_p5 = scmp.lt.s32.totalorder (!%p188_p3), %s2294_s16, 1  ;;  %p230_p6 = scmp.lt.s32.totalorder (!%p188_p3), %s2290_s15, 1 }
   0x9   : > { %s3130_s21 = smov (%p29_p4, %s3128_s21), 0  ;;  %191 = sbr.rel (%p188_p3) target bundleno = 678 (0x2a6), region = 32 }
   0xa   : > { %s2308_s29 = smov (!%p188_p3), 4   ;;  %s2309_s30 = smov (!%p188_p3), 8  }
   0xb   : > { %s2310_s5 = smov (!%p188_p3), 12   ;;  %s2311_s6 = smov (!%p188_p3), 16  }
   0xc   : > { %s2312_s7 = smov (!%p188_p3), 20   ;;  %s2313_s8 = smov (!%p188_p3), 24  }
   0xd   : > { %s2314_s9 = smov (!%p188_p3), 28   ;;  %s2315_s10 = smov (!%p188_p3), 32  }
   0xe   : > { %s3132_s16 = smov (!%p228_p5, %s2294_s16), 1  ;;  %s3134_s15 = smov (!%p230_p6, %s2290_s15), 1  ;;  %vm335_vm0 = vcmask 1042432   ;;  %vm336_vm1 = vcmask 1046532   ;;  %vm507_vm3 = vcmask 1041408   ;;  %vm508_vm4 = vcmask 1045508  }
   0xf   : > { %s2208_s22 = smul.u32 72, %s3132_s16  ;;  %vm2382_vm2 = vmor %vm335_vm0, %vm336_vm1  ;;  %vm270_vm6 = vcmask 27648   ;;  %vm442_vm7 = vcmask 60448   ;;  %vm614_vm8 = vcmask 93248   ;;  %vm712_vm9 = vcmask 126048   ;;  %s1964_s26 = sshll.u32 %s3132_s16, 1 }
  0x10   : > { %s2207_s23 = smul.u32 36, %s3134_s15  ;;  %vm2397_vm5 = vmor %vm507_vm3, %vm508_vm4  ;;  %vm881_vm10 = vcmask 158848   ;;  %vm1050_vm11 = vcmask 191648   ;;  %vm1148_vm12 = vcmask 224448   ;;  %vm1317_vm13 = vcmask 257248   ;;  %s242_s27 = sadd.s32 %s1964_s26, %s3134_s15 }
  0x11   : > { %vm1486_vm14 = vcmask 290048   ;;  %vm1586_vm15 = vcmask 293888   ;;  %vm1786_vm0 = vcmask 1040384  }
  0x12   : > { %s234_s24 = sadd.s32 %s2208_s22, %s2207_s23 }
  0x13   : > { %s1963_s25 = sshll.u32 %s234_s24, 2 }
  0x14   : > { %s2380_s28 = scalar_lea.vmem %s3112_s0, %s1963_s25 }
  0x15   : > { %v290_v1 = vld [vmem:[%s2380_s28 + $0xc] sm:$0xe]  ;;  %v291_v2 = vld [vmem:[%s2380_s28 + $0x10] sm:$0xf]  ;;  %v287_v3 = vld [vmem:[%s2380_s28] sm:$0xe] }
  0x16   : > { %v1969_v4 = vrot.slane %v290_v1, 9  ;;  %v347_v5 = vrot.slane %v291_v2, 5  ;;  %v288_v6 = vld [vmem:[%s2380_s28 + $0x4] sm:$0xf]  ;;  %v1968_v7 = vrot.slane %v287_v3, 9 }
  0x17   : > { %v340_v8 = vrot.slane %v288_v6, 5  ;;  %v292_v9 = vld [vmem:[%s2380_s28 + $0x14] sm:$0x1]  ;;  %v459_v10 = vld [vmem:[%s2380_s28] sm:$0xc] }
  0x18   : > { %v348_v11 = vsel %vm2382_vm2, %v1969_v4, %v347_v5  ;;  %v349_v12 = vrot.slane %v347_v5, 4  ;;  %v350_v13 = vrot.slane %v292_v9, 5  ;;  %v460_v14 = vld [vmem:[%s2380_s28 + $0x4] sm:$0xf]  ;;  %v1976_v16 = vrot.slane %v459_v10, 10 }
  0x19   : > { %398 = vrot.lane.b32.xlu1 %v348_v11, %s2308_s29  ;;  %v341_v17 = vsel %vm2382_vm2, %v1968_v7, %v340_v8  ;;  %v512_v18 = vrot.slane %v460_v14, 6  ;;  %v461_v19 = vld [vmem:[%s2380_s28 + $0x8] sm:$0x3]  ;;  %v462_v20 = vld [vmem:[%s2380_s28 + $0xc] sm:$0xc]  ;;  %v342_v34 = vrot.slane %v340_v8, 4 }
  0x1a   : > { %394 = vrot.lane.b32.xlu0 %v341_v17, %s2308_s29  ;;  %v351_v21 = vsel %vm2382_vm2, %v349_v12, %v350_v13  ;;  %v515_v22 = vrot.slane %v461_v19, 6  ;;  %v463_v23 = vld [vmem:[%s2380_s28 + $0x10] sm:$0xf]  ;;  %v1977_v26 = vrot.slane %v462_v20, 10  ;;  %v464_v28 = vld [vmem:[%s2380_s28 + $0x14] sm:$0x3] }
  0x1b   : > { %v513_v24 = vsel %vm2397_vm5, %v1976_v16, %v512_v18  ;;  %v514_v25 = vrot.slane %v512_v18, 4  ;;  %v519_v27 = vrot.slane %v463_v23, 6  ;;  %v289_v29 = vld [vmem:[%s2380_s28 + $0x8] sm:$0x1]  ;;  %v522_v32 = vrot.slane %v464_v28, 6 }
  0x1c   : > { %v343_v35 = vrot.slane %v289_v29, 5  ;;  %v2001_v38 = vld [vmem:[%s2380_s28 + $0x1c] sm:$0xf]  ;;  %v1984_v41 = vld [vmem:[%s2380_s28 + $0x18] sm:$0xf] }
  0x1d   : > { %400 = vrot.lane.b32.xlu1 %v351_v21, %s2308_s29  ;;  %v516_v30 = vsel %vm2397_vm5, %v514_v25, %v515_v22  ;;  %v521_v31 = vrot.slane %v519_v27, 4  ;;  %v520_v33 = vsel %vm2397_vm5, %v1977_v26, %v519_v27  ;;  %v1985_v39 = vld [vmem:[%s2380_s28 + $0x1c] sm:$0xf]  ;;  %v779_v40 = vrot.slane %v2001_v38, 5  ;;  %v2002_v42 = vld [vmem:[%s2380_s28 + $0x20] sm:$0x1] }
  0x1e   : > { %566 = vrot.lane.b32.xlu0 %v513_v24, %s2309_s30  ;;  %v344_v37 = vsel %vm2382_vm2, %v342_v34, %v343_v35  ;;  %v2004_v43 = vld [vmem:[%s2380_s28 + $0x28] sm:$0xf]  ;;  %v2000_v44 = vld [vmem:[%s2380_s28 + $0x18] sm:$0xe]  ;;  %v1986_v46 = vld [vmem:[%s2380_s28 + $0x24] sm:$0xf] }
  0x1f   : > { %v523_v36 = vsel %vm2397_vm5, %v521_v31, %v522_v32  ;;  %v1987_v45 = vld [vmem:[%s2380_s28 + $0x28] sm:$0xf]  ;;  %v781_v47 = vrot.slane %v779_v40, 4  ;;  %v782_v48 = vrot.slane %v2002_v42, 5  ;;  %v786_v49 = vrot.slane %v2004_v43, 5 }
  0x20   : > { %v2024_v50 = vrot.slane %v2000_v44, 9  ;;  %v2005_v51 = vld [vmem:[%s2380_s28 + $0x2c] sm:$0x1]  ;;  %v2033_v52 = vld [vmem:[%s2380_s28 + $0x1c] sm:$0xf] }
  0x21   : > { %568 = vrot.lane.b32.xlu1 %v516_v30, %s2309_s30  ;;  %v2003_v53 = vld [vmem:[%s2380_s28 + $0x24] sm:$0xe]  ;;  %v783_v54 = vsel %vm2382_vm2, %v781_v47, %v782_v48  ;;  %v788_v55 = vrot.slane %v786_v49, 4  ;;  %v789_v56 = vrot.slane %v2005_v51, 5  ;;  %v948_v57 = vrot.slane %v2033_v52, 6 }
  0x22   : > { %570 = vrot.lane.b32.xlu0 %v520_v33, %s2309_s30  ;;  %v780_v58 = vsel %vm2382_vm2, %v2024_v50, %v779_v40  ;;  %v2025_v59 = vrot.slane %v2003_v53, 9  ;;  %v2034_v60 = vld [vmem:[%s2380_s28 + $0x20] sm:$0x3]  ;;  %v2036_v61 = vld [vmem:[%s2380_s28 + $0x28] sm:$0xf] }
  0x23   : > { %v2032_v62 = vld [vmem:[%s2380_s28 + $0x18] sm:$0xc]  ;;  %v790_v63 = vsel %vm2382_vm2, %v788_v55, %v789_v56  ;;  %v950_v1 = vrot.slane %v948_v57, 4  ;;  %v951_v2 = vrot.slane %v2034_v60, 6  ;;  %v955_v3 = vrot.slane %v2036_v61, 6 }
  0x24   : > { %v787_v4 = vsel %vm2382_vm2, %v2025_v59, %v786_v49  ;;  %v2056_v5 = vrot.slane %v2032_v62, 10  ;;  %v2037_v6 = vld [vmem:[%s2380_s28 + $0x2c] sm:$0x3]  ;;  %v2035_v7 = vld [vmem:[%s2380_s28 + $0x24] sm:$0xc] }
  0x25   : > { %572 = vrot.lane.b32.xlu1 %v523_v36, %s2309_s30  ;;  %v952_v8 = vsel %vm2397_vm5, %v950_v1, %v951_v2  ;;  %v957_v9 = vrot.slane %v955_v3, 4  ;;  %v958_v10 = vrot.slane %v2037_v6, 6  ;;  %v2057_v12 = vrot.slane %v2035_v7, 10  ;;  %v2081_v16 = vld [vmem:[%s2380_s28 + $0x34] sm:$0xf] }
  0x26   : > { %396 = vrot.lane.b32.xlu0 %v344_v37, %s2308_s29  ;;  %v949_v11 = vsel %vm2397_vm5, %v2056_v5, %v948_v57  ;;  %v2065_v17 = vld [vmem:[%s2380_s28 + $0x34] sm:$0xf]  ;;  %v2064_v18 = vld [vmem:[%s2380_s28 + $0x30] sm:$0xf]  ;;  %v1215_v19 = vrot.slane %v2081_v16, 5 }
  0x27   : > { %v959_v13 = vsel %vm2397_vm5, %v957_v9, %v958_v10  ;;  %v956_v14 = vsel %vm2397_vm5, %v2057_v12, %v955_v3  ;;  %v2082_v20 = vld [vmem:[%s2380_s28 + $0x38] sm:$0x1]  ;;  %v2080_v21 = vld [vmem:[%s2380_s28 + $0x30] sm:$0xe]  ;;  %v2084_v22 = vld [vmem:[%s2380_s28 + $0x40] sm:$0xf] }
  0x28   : > { %v2067_v23 = vld [vmem:[%s2380_s28 + $0x40] sm:$0xf]  ;;  %v2066_v24 = vld [vmem:[%s2380_s28 + $0x3c] sm:$0xf]  ;;  %v1217_v25 = vrot.slane %v1215_v19, 4  ;;  %v1218_v26 = vrot.slane %v2082_v20, 5 }
  0x29   : > { %666 = vrot.lane.b32.xlu1 %v1985_v39, %s2310_s5  ;;  %v2104_v27 = vrot.slane %v2080_v21, 9  ;;  %v1222_v28 = vrot.slane %v2084_v22, 5  ;;  %v256_v29 = vld [vmem:[%s2380_s28 + $0xc] sm:$0xf]  ;;  %v2085_v30 = vld [vmem:[%s2380_s28 + $0x44] sm:$0x1] }
  0x2a   : > { %664 = vrot.lane.b32.xlu0 %v1984_v41, %s2310_s5  ;;  %v2113_v31 = vld [vmem:[%s2380_s28 + $0x34] sm:$0xf]  ;;  %273 = vst.msk [vmem:[#allocation2 + $0x8] sm:$0xf] %vm270_vm6, %v256_v29  ;;  %v254_v32 = vld [vmem:[%s2380_s28] sm:$0xf]  ;;  %v1219_v35 = vsel %vm2382_vm2, %v1217_v25, %v1218_v26 }
  0x2b   : > { %v2083_v33 = vld [vmem:[%s2380_s28 + $0x3c] sm:$0xe]  ;;  %271 = vst.msk [vmem:[#allocation2] sm:$0xf] %vm270_vm6, %v254_v32  ;;  %v257_v34 = vld [vmem:[%s2380_s28 + $0x10] sm:$0xf]  ;;  %v1216_v39 = vsel %vm2382_vm2, %v2104_v27, %v1215_v19 }
  0x2c   : > { %v1224_v36 = vrot.slane %v1222_v28, 4  ;;  %v1225_v37 = vrot.slane %v2085_v30, 5  ;;  %v1384_v38 = vrot.slane %v2113_v31, 6  ;;  %274 = vst.msk [vmem:[#allocation2 + $0xc] sm:$0xf] %vm270_vm6, %v257_v34  ;;  %v2105_v40 = vrot.slane %v2083_v33, 9 }
  0x2d   : > { %670 = vrot.lane.b32.xlu1 %v1987_v45, %s2310_s5  ;;  %v2114_v41 = vld [vmem:[%s2380_s28 + $0x38] sm:$0x3]  ;;  %v294_v42 = vld [vmem:[%s2380_s28 + $0x1c] sm:$0xf]  ;;  %v2112_v43 = vld [vmem:[%s2380_s28 + $0x30] sm:$0xc] }
  0x2e   : > { %668 = vrot.lane.b32.xlu0 %v1986_v46, %s2310_s5  ;;  %v255_v44 = vld [vmem:[%s2380_s28 + $0x4] sm:$0xf]  ;;  %v1226_v45 = vsel %vm2382_vm2, %v1224_v36, %v1225_v37  ;;  %v1386_v46 = vrot.slane %v1384_v38, 4  ;;  %v1387_v47 = vrot.slane %v2114_v41, 6  ;;  %v354_v48 = vrot.slane %v294_v42, 5  ;;  %v2258_v33 = vld [vmem:[%s3113_s1 + $0x8] sm:$0xff]  }
  0x2f   : > { %272 = vst.msk [vmem:[#allocation2 + $0x4] sm:$0xf] %vm270_vm6, %v255_v44  ;;  %v1223_v49 = vsel %vm2382_vm2, %v2105_v40, %v1222_v28  ;;  %v2136_v50 = vrot.slane %v2112_v43, 10  ;;  %v295_v51 = vld [vmem:[%s2380_s28 + $0x20] sm:$0x1] }
  0x30   : > { %v2116_v52 = vld [vmem:[%s2380_s28 + $0x40] sm:$0xf]  ;;  %v293_v53 = vld [vmem:[%s2380_s28 + $0x18] sm:$0xe]  ;;  %v356_v55 = vrot.slane %v354_v48, 4  ;;  %v357_v56 = vrot.slane %v295_v51, 5 }
  0x31   : > { %835 = vrot.lane.b32.xlu1 %v783_v54, %s2311_s6  ;;  %v1388_v54 = vsel %vm2397_vm5, %v1386_v46, %v1387_v47  ;;  %v1391_v57 = vrot.slane %v2116_v52, 6  ;;  %v1970_v59 = vrot.slane %v293_v53, 9  ;;  %v2117_v60 = vld [vmem:[%s2380_s28 + $0x44] sm:$0x3]  ;;  %v297_v61 = vld [vmem:[%s2380_s28 + $0x28] sm:$0xf] }
  0x32   : > { %833 = vrot.lane.b32.xlu0 %v780_v58, %s2311_s6  ;;  %v1385_v58 = vsel %vm2397_vm5, %v2136_v50, %v1384_v38  ;;  %v2115_v62 = vld [vmem:[%s2380_s28 + $0x3c] sm:$0xc]  ;;  %v1394_v2 = vrot.slane %v2117_v60, 6  ;;  %v361_v3 = vrot.slane %v297_v61, 5  ;;  %v298_v6 = vld [vmem:[%s2380_s28 + $0x2c] sm:$0x1] }
  0x33   : > { %v1393_v1 = vrot.slane %v1391_v57, 4  ;;  %v2137_v5 = vrot.slane %v2115_v62, 10  ;;  %v466_v7 = vld [vmem:[%s2380_s28 + $0x1c] sm:$0xf]  ;;  %v467_v16 = vld [vmem:[%s2380_s28 + $0x20] sm:$0x3] }
  0x34   : > { %v363_v10 = vrot.slane %v361_v3, 4  ;;  %v526_v12 = vrot.slane %v466_v7, 6  ;;  %v529_v21 = vrot.slane %v467_v16, 6  ;;  %v470_v25 = vld [vmem:[%s2380_s28 + $0x2c] sm:$0x3]  ;;  %v2260_v40 = vld [vmem:[%s3113_s1] sm:$0xff]  }
  0x35   : > { %839 = vrot.lane.b32.xlu1 %v790_v63, %s2311_s6  ;;  %v358_v63 = vsel %vm2382_vm2, %v356_v55, %v357_v56  ;;  %v1395_v9 = vsel %vm2397_vm5, %v1393_v1, %v1394_v2  ;;  %v468_v26 = vld [vmem:[%s2380_s28 + $0x24] sm:$0xc]  ;;  %v259_v27 = vld [vmem:[%s2380_s28 + $0x1c] sm:$0xf]  ;;  %v258_v28 = vld [vmem:[%s2380_s28 + $0x18] sm:$0xf] }
  0x36   : > { %837 = vrot.lane.b32.xlu0 %v787_v4, %s2311_s6  ;;  %v355_v4 = vsel %vm2382_vm2, %v1970_v59, %v354_v48  ;;  %v528_v20 = vrot.slane %v526_v12, 4  ;;  %276 = vst.msk [vmem:[#allocation2 + $0x14] sm:$0xf] %vm270_vm6, %v259_v27  ;;  %275 = vst.msk [vmem:[#allocation2 + $0x10] sm:$0xf] %vm270_vm6, %v258_v28  ;;  %v536_v31 = vrot.slane %v470_v25, 6 }
  0x37   : > { %v2257_v32 = vld [vmem:[%s3113_s1 + $0x10] ss:$0 sps:$4 sm:$0x33]   ;;  %v261_v37 = vld [vmem:[%s2380_s28 + $0x28] sm:$0xf] }
  0x38   : > { %v530_v29 = vsel %vm2397_vm5, %v528_v20, %v529_v21  ;;  %2205 = vmatprep.subr.msk.bf16.mxu0 %vm507_vm3, %v2257_v32  ;;  %v1613_v36 = vsel %vm507_vm3, %v2257_v32, 0  ;;  %2206 = vmatprep.subr.msk.bf16.mxu1 %vm507_vm3, %v2257_v32  ;;  %v260_v38 = vld [vmem:[%s2380_s28 + $0x24] sm:$0xf]  ;;  %278 = vst.msk [vmem:[#allocation2 + $0x1c] sm:$0xf] %vm270_vm6, %v261_v37 }
  0x39   : > { %1004 = vrot.lane.b32.xlu1 %v952_v8, %s2312_s7  ;;  %v296_v8 = vld [vmem:[%s2380_s28 + $0x24] sm:$0xe]  ;;  %2178 = vmatpush3.bf16.msra.mxu0 %v1613_v36  ;;  %277 = vst.msk [vmem:[#allocation2 + $0x18] sm:$0xf] %vm270_vm6, %v260_v38  ;;  %v2007_v42 = vld [vmem:[%s2380_s28 + $0x34] sm:$0xf] }
  0x3a   : > { %1002 = vrot.lane.b32.xlu0 %v949_v11, %s2312_s7  ;;  %v364_v11 = vrot.slane %v298_v6, 5  ;;  %2179 = vmatprep.subr.bf16.mxu0 %v2258_v33  ;;  %v1989_v43 = vld [vmem:[%s2380_s28 + $0x34] sm:$0xf]  ;;  %v793_v44 = vrot.slane %v2007_v42, 5  ;;  %v2008_v46 = vld [vmem:[%s2380_s28 + $0x38] sm:$0x1] }
  0x3b   : > { %2202 = vmatpush3.bf16.msra.mxu1 %v1613_v36  ;;  %v2010_v47 = vld [vmem:[%s2380_s28 + $0x40] sm:$0xf]  ;;  %v2006_v48 = vld [vmem:[%s2380_s28 + $0x30] sm:$0xe]  ;;  %v1990_v50 = vld [vmem:[%s2380_s28 + $0x3c] sm:$0xf] }
  0x3c   : > { %v365_v19 = vsel %vm2382_vm2, %v363_v10, %v364_v11  ;;  %2200 = vmatprep.subr.bf16.mxu1 %v2258_v33  ;;  %v795_v51 = vrot.slane %v793_v44, 4  ;;  %v796_v52 = vrot.slane %v2008_v46, 5  ;;  %v800_v53 = vrot.slane %v2010_v47, 5  ;;  %v2011_v55 = vld [vmem:[%s2380_s28 + $0x44] sm:$0x1] }
  0x3d   : > { %1008 = vrot.lane.b32.xlu1 %v959_v13, %s2312_s7  ;;  %v1392_v13 = vsel %vm2397_vm5, %v2137_v5, %v1391_v57  ;;  %2180 = vmatpush3.bf16.msra.mxu0 %v2258_v33  ;;  %v2039_v56 = vld [vmem:[%s2380_s28 + $0x34] sm:$0xf]  ;;  %v2009_v57 = vld [vmem:[%s2380_s28 + $0x3c] sm:$0xe]  ;;  %v803_v60 = vrot.slane %v2011_v55, 5 }
  0x3e   : > { %1006 = vrot.lane.b32.xlu0 %v956_v14, %s2312_s7  ;;  %v1971_v14 = vrot.slane %v296_v8, 9  ;;  %2181 = vmatprep.subr.bf16.mxu0 %v2260_v40  ;;  %v802_v59 = vrot.slane %v800_v53, 4  ;;  %v962_v61 = vrot.slane %v2039_v56, 6  ;;  %v2040_v1 = vld [vmem:[%s2380_s28 + $0x38] sm:$0x3] }
  0x3f   : > { %2203 = vmatpush3.bf16.msra.mxu1 %v2258_v33  ;;  %v2042_v2 = vld [vmem:[%s2380_s28 + $0x40] sm:$0xf]  ;;  %v965_v6 = vrot.slane %v2040_v1, 6  ;;  %v2043_v10 = vld [vmem:[%s2380_s28 + $0x44] sm:$0x3] }
  0x40   : > { %2201 = vmatprep.subr.bf16.mxu1 %v2260_v40  ;;  %v964_v5 = vrot.slane %v962_v61, 4  ;;  %v969_v7 = vrot.slane %v2042_v2, 6  ;;  %v2041_v11 = vld [vmem:[%s2380_s28 + $0x3c] sm:$0xc]  ;;  %v2087_v20 = vld [vmem:[%s2380_s28 + $0x4c] sm:$0xf] }
  0x41   : > { %1102 = vrot.lane.b32.xlu1 %v2065_v17, %s2313_s8  ;;  %v469_v17 = vld [vmem:[%s2380_s28 + $0x28] sm:$0xf]  ;;  %2182 = vmatpush3.bf16.msra.mxu0 %v2260_v40  ;;  %v2069_v21 = vld [vmem:[%s2380_s28 + $0x4c] sm:$0xf]  ;;  %v2090_v25 = vld [vmem:[%s2380_s28 + $0x58] sm:$0xf] }
  0x42   : > { %1100 = vrot.lane.b32.xlu0 %v2064_v18, %s2313_s8  ;;  %v465_v18 = vld [vmem:[%s2380_s28 + $0x18] sm:$0xc]  ;;  %v533_v22 = vrot.slane %v469_v17, 6  ;;  %v2059_v17 = vrot.slane %v2041_v11, 10  ;;  %v2070_v28 = vld [vmem:[%s2380_s28 + $0x54] sm:$0xf] }
  0x43   : > { %2204 = vmatpush3.bf16.msra.mxu1 %v2260_v40  ;;  %v2071_v27 = vld [vmem:[%s2380_s28 + $0x58] sm:$0xf]  ;;  %v1236_v32 = vrot.slane %v2090_v25, 5  ;;  %v2120_v40 = vld [vmem:[%s2380_s28 + $0x50] sm:$0x3] }
  0x44   : > { %v535_v30 = vrot.slane %v533_v22, 4  ;;  %v2118_v46 = vld [vmem:[%s2380_s28 + $0x48] sm:$0xc]  ;;  %v299_v55 = vld [vmem:[%s2380_s28 + $0x30] sm:$0xe] }
  0x45   : > { %1106 = vrot.lane.b32.xlu1 %v2067_v23, %s2313_s8  ;;  %v362_v23 = vsel %vm2382_vm2, %v1971_v14, %v361_v3  ;;  %v2038_v3 = vld [vmem:[%s2380_s28 + $0x30] sm:$0xc]  ;;  %v972_v14 = vrot.slane %v2043_v10, 6  ;;  %v1238_v38 = vrot.slane %v1236_v32, 4  ;;  %v2122_v56 = vld [vmem:[%s2380_s28 + $0x58] sm:$0xf] }
  0x46   : > { %1104 = vrot.lane.b32.xlu0 %v2066_v24, %s2313_s8  ;;  %v1978_v24 = vrot.slane %v465_v18, 10 }
  0x48   : > { %v527_v34 = vsel %vm2397_vm5, %v1978_v24, %v526_v12  ;;  %v966_v12 = vsel %vm2397_vm5, %v964_v5, %v965_v6  ;;  %v2088_v24 = vld [vmem:[%s2380_s28 + $0x50] sm:$0x1]  ;;  %v264_v5 = vld [vmem:[%s2380_s28 + $0x3c] sm:$0xf] }
  0x49   : > { %1271 = vrot.lane.b32.xlu1 %v1219_v35, %s2314_s9  ;;  %v1979_v35 = vrot.slane %v468_v26, 10  ;;  %v2086_v26 = vld [vmem:[%s2380_s28 + $0x48] sm:$0xe]  ;;  %281 = vst.msk [vmem:[#allocation2 + $0x28] sm:$0xf] %vm270_vm6, %v264_v5 }
  0x4a   : > { %1269 = vrot.lane.b32.xlu0 %v1216_v39, %s2314_s9  ;;  %v537_v39 = vsel %vm2397_vm5, %v535_v30, %v536_v31  ;;  %v1232_v30 = vrot.slane %v2088_v24, 5  ;;  %v2091_v31 = vld [vmem:[%s2380_s28 + $0x5c] sm:$0x1]  ;;  %v2106_v33 = vrot.slane %v2086_v26, 9 }
  0x4b   : > { %v534_v41 = vsel %vm2397_vm5, %v1979_v35, %v533_v22  ;;  %v1229_v22 = vrot.slane %v2087_v20, 5  ;;  %v2119_v35 = vld [vmem:[%s2380_s28 + $0x4c] sm:$0xf]  ;;  %v1239_v36 = vrot.slane %v2091_v31, 5  ;;  %v2017_v5 = vld [vmem:[%s2380_s28 + $0x5c] sm:$0x1] }
  0x4d   : > { %1275 = vrot.lane.b32.xlu1 %v1226_v45, %s2314_s9  ;;  %v1988_v45 = vld [vmem:[%s2380_s28 + $0x30] sm:$0xf]  ;;  %v1230_v42 = vsel %vm2382_vm2, %v2106_v33, %v1229_v22  ;;  %v1240_v47 = vsel %vm2382_vm2, %v1238_v38, %v1239_v36  ;;  %v476_v38 = vld [vmem:[%s2380_s28 + $0x44] sm:$0x3] }
  0x4e   : > { %1273 = vrot.lane.b32.xlu0 %v1223_v49, %s2314_s9  ;;  %v1991_v49 = vld [vmem:[%s2380_s28 + $0x40] sm:$0xf] }
  0x51   : > { %1440 = vrot.lane.b32.xlu1 %v1388_v54, %s2315_s10  ;;  %v2026_v54 = vrot.slane %v2006_v48, 9 }
  0x52   : > { %1438 = vrot.lane.b32.xlu0 %v1385_v58, %s2315_s10  ;;  %v797_v58 = vsel %vm2382_vm2, %v795_v51, %v796_v52 }
  0x53   : > { %v794_v62 = vsel %vm2382_vm2, %v2026_v54, %v793_v44  ;;  %v263_v44 = vld [vmem:[%s2380_s28 + $0x34] sm:$0xf]  ;;  %v2138_v54 = vrot.slane %v2118_v46, 10 }
  0x54   : > { %280 = vst.msk [vmem:[#allocation2 + $0x24] sm:$0xf] %vm270_vm6, %v263_v44 }
  0x55   : > { %404 = vrot.lane.b32.xlu1 %v358_v63, %s2308_s29  ;;  %v2027_v63 = vrot.slane %v2009_v57, 9 }
  0x56   : > { %402 = vrot.lane.b32.xlu0 %v355_v4, %s2308_s29  ;;  %v804_v4 = vsel %vm2382_vm2, %v802_v59, %v803_v60 }
  0x57   : > { %v801_v8 = vsel %vm2382_vm2, %v2027_v63, %v800_v53  ;;  %v1405_v63 = vrot.slane %v2122_v56, 6  ;;  %v1992_v56 = vld [vmem:[%s2380_s28 + $0x48] sm:$0xf] }
  0x59   : > { %1444 = vrot.lane.b32.xlu1 %v1395_v9, %s2315_s10  ;;  %v2058_v9 = vrot.slane %v2038_v3, 10  ;;  %v303_v3 = vld [vmem:[%s2380_s28 + $0x40] sm:$0xf] }
  0x5a   : > { %1442 = vrot.lane.b32.xlu0 %v1392_v13, %s2315_s10  ;;  %v971_v13 = vrot.slane %v969_v7, 4  ;;  %v375_v11 = vrot.slane %v303_v3, 5 }
  0x5b   : > { %v963_v16 = vsel %vm2397_vm5, %v2058_v9, %v962_v61  ;;  %v1972_v61 = vrot.slane %v299_v55, 9  ;;  %v1407_v9 = vrot.slane %v1405_v63, 4 }
  0x5c   : > { %v973_v18 = vsel %vm2397_vm5, %v971_v13, %v972_v14 }
  0x5d   : > { %408 = vrot.lane.b32.xlu1 %v365_v19, %s2308_s29  ;;  %v970_v19 = vsel %vm2397_vm5, %v2059_v17, %v969_v7  ;;  %v2121_v7 = vld [vmem:[%s2380_s28 + $0x54] sm:$0xc] }
  0x5e   : > { %406 = vrot.lane.b32.xlu0 %v362_v23, %s2308_s29  ;;  %v2068_v23 = vld [vmem:[%s2380_s28 + $0x48] sm:$0xf]  ;;  %v2139_v14 = vrot.slane %v2121_v7, 10  ;;  %v472_v17 = vld [vmem:[%s2380_s28 + $0x34] sm:$0xf] }
  0x60   : > { %v1406_v25 = vsel %vm2397_vm5, %v2139_v14, %v1405_v63 }
  0x61   : > { %576 = vrot.lane.b32.xlu1 %v530_v29, %s2309_s30  ;;  %v1231_v29 = vrot.slane %v1229_v22, 4 }
  0x62   : > { %574 = vrot.lane.b32.xlu0 %v527_v34, %s2309_s30  ;;  %v2089_v34 = vld [vmem:[%s2380_s28 + $0x54] sm:$0xe] }
  0x63   : > { %v1233_v37 = vsel %vm2382_vm2, %v1231_v29, %v1232_v30  ;;  %v471_v30 = vld [vmem:[%s2380_s28 + $0x30] sm:$0xc] }
  0x65   : > { %580 = vrot.lane.b32.xlu1 %v537_v39, %s2309_s30  ;;  %v2107_v39 = vrot.slane %v2089_v34, 9 }
  0x66   : > { %578 = vrot.lane.b32.xlu0 %v534_v41, %s2309_s30  ;;  %v1398_v41 = vrot.slane %v2119_v35, 6 }
  0x67   : > { %v1237_v53 = vsel %vm2382_vm2, %v2107_v39, %v1236_v32 }
  0x68   : > { %v1400_v48 = vrot.slane %v1398_v41, 4  ;;  %v1399_v2 = vsel %vm2397_vm5, %v2138_v54, %v1398_v41 }
  0x69   : > { %674 = vrot.lane.b32.xlu1 %v1989_v43, %s2310_s5  ;;  %v300_v43 = vld [vmem:[%s2380_s28 + $0x34] sm:$0xf] }
  0x6a   : > { %672 = vrot.lane.b32.xlu0 %v1988_v45, %s2310_s5  ;;  %v262_v45 = vld [vmem:[%s2380_s28 + $0x30] sm:$0xf]  ;;  %v368_v51 = vrot.slane %v300_v43, 5  ;;  %v550_v43 = vrot.slane %v476_v38, 6 }
  0x6b   : > { %279 = vst.msk [vmem:[#allocation2 + $0x20] sm:$0xf] %vm270_vm6, %v262_v45 }
  0x6c   : > { %v370_v60 = vrot.slane %v368_v51, 4  ;;  %v369_v13 = vsel %vm2382_vm2, %v1972_v61, %v368_v51  ;;  %v2013_v51 = vld [vmem:[%s2380_s28 + $0x4c] sm:$0xf]  ;;  %v1995_v61 = vld [vmem:[%s2380_s28 + $0x58] sm:$0xf] }
  0x6d   : > { %678 = vrot.lane.b32.xlu1 %v1991_v49, %s2310_s5  ;;  %v1401_v49 = vrot.slane %v2120_v40, 6  ;;  %v474_v40 = vld [vmem:[%s2380_s28 + $0x3c] sm:$0xc]  ;;  %v807_v54 = vrot.slane %v2013_v51, 5  ;;  %v2075_v51 = vld [vmem:[%s2380_s28 + $0x70] sm:$0xf] }
  0x6e   : > { %676 = vrot.lane.b32.xlu0 %v1990_v50, %s2310_s5  ;;  %v301_v50 = vld [vmem:[%s2380_s28 + $0x38] sm:$0x1]  ;;  %v1981_v46 = vrot.slane %v474_v40, 10 }
  0x6f   : > { %v1402_v59 = vsel %vm2397_vm5, %v1400_v48, %v1401_v49  ;;  %v809_v63 = vrot.slane %v807_v54, 4 }
  0x71   : > { %843 = vrot.lane.b32.xlu1 %v797_v58, %s2311_s6  ;;  %v371_v58 = vrot.slane %v301_v50, 5 }
  0x72   : > { %841 = vrot.lane.b32.xlu0 %v794_v62, %s2311_s6  ;;  %v2123_v62 = vld [vmem:[%s2380_s28 + $0x5c] sm:$0x3] }
  0x73   : > { %v1408_v10 = vrot.slane %v2123_v62, 6  ;;  %v1994_v62 = vld [vmem:[%s2380_s28 + $0x54] sm:$0xf] }
  0x75   : > { %847 = vrot.lane.b32.xlu1 %v804_v4, %s2311_s6  ;;  %v265_v4 = vld [vmem:[%s2380_s28 + $0x40] sm:$0xf]  ;;  %v1409_v20 = vsel %vm2397_vm5, %v1407_v9, %v1408_v10 }
  0x76   : > { %845 = vrot.lane.b32.xlu0 %v801_v8, %s2311_s6  ;;  %282 = vst.msk [vmem:[#allocation2 + $0x2c] sm:$0xf] %vm270_vm6, %v265_v4  ;;  %v372_v8 = vsel %vm2382_vm2, %v370_v60, %v371_v58  ;;  %v2016_v58 = vld [vmem:[%s2380_s28 + $0x58] sm:$0xf]  ;;  %v2012_v60 = vld [vmem:[%s2380_s28 + $0x48] sm:$0xe] }
  0x77   : > { %v2028_v4 = vrot.slane %v2012_v60, 9  ;;  %v2125_v60 = vld [vmem:[%s2380_s28 + $0x64] sm:$0xf] }
  0x79   : > { %1012 = vrot.lane.b32.xlu1 %v966_v12, %s2312_s7  ;;  %v808_v14 = vsel %vm2382_vm2, %v2028_v4, %v807_v54  ;;  %v1412_v4 = vrot.slane %v2125_v60, 6  ;;  %v477_v60 = vld [vmem:[%s2380_s28 + $0x48] sm:$0xc] }
  0x7a   : > { %1010 = vrot.lane.b32.xlu0 %v963_v16, %s2312_s7  ;;  %v304_v16 = vld [vmem:[%s2380_s28 + $0x44] sm:$0x1] }
  0x7b   : > { %v378_v22 = vrot.slane %v304_v16, 5 }
  0x7d   : > { %1016 = vrot.lane.b32.xlu1 %v973_v18, %s2312_s7 }
  0x7e   : > { %1014 = vrot.lane.b32.xlu0 %v970_v19, %s2312_s7  ;;  %v302_v19 = vld [vmem:[%s2380_s28 + $0x3c] sm:$0xe] }
  0x7f   : > { %v1973_v26 = vrot.slane %v302_v19, 9 }
  0x81   : > { %1110 = vrot.lane.b32.xlu1 %v2069_v21, %s2313_s8  ;;  %v377_v21 = vrot.slane %v375_v11, 4  ;;  %v376_v36 = vsel %vm2382_vm2, %v1973_v26, %v375_v11  ;;  %v817_v11 = vrot.slane %v2017_v5, 5 }
  0x82   : > { %1108 = vrot.lane.b32.xlu0 %v2068_v23, %s2313_s8  ;;  %v540_v23 = vrot.slane %v472_v17, 6  ;;  %v2046_v17 = vld [vmem:[%s2380_s28 + $0x50] sm:$0x3] }
  0x83   : > { %v379_v31 = vsel %vm2382_vm2, %v377_v21, %v378_v22 }
  0x84   : > { %v542_v32 = vrot.slane %v540_v23, 4 }
  0x85   : > { %1114 = vrot.lane.b32.xlu1 %v2071_v27, %s2313_s8  ;;  %v473_v27 = vld [vmem:[%s2380_s28 + $0x38] sm:$0x3] }
  0x86   : > { %1112 = vrot.lane.b32.xlu0 %v2070_v28, %s2313_s8  ;;  %v475_v28 = vld [vmem:[%s2380_s28 + $0x40] sm:$0xf]  ;;  %v543_v33 = vrot.slane %v473_v27, 6 }
  0x87   : > { %v547_v34 = vrot.slane %v475_v28, 6  ;;  %v2049_v28 = vld [vmem:[%s2380_s28 + $0x5c] sm:$0x3] }
  0x88   : > { %v544_v41 = vsel %vm2397_vm5, %v542_v32, %v543_v33  ;;  %v986_v33 = vrot.slane %v2049_v28, 6 }
  0x89   : > { %1279 = vrot.lane.b32.xlu1 %v1233_v37, %s2314_s9  ;;  %v1980_v37 = vrot.slane %v471_v30, 10  ;;  %v548_v50 = vsel %vm2397_vm5, %v1981_v46, %v547_v34  ;;  %v2047_v30 = vld [vmem:[%s2380_s28 + $0x54] sm:$0xc]  ;;  %v2072_v46 = vld [vmem:[%s2380_s28 + $0x60] sm:$0xf] }
  0x8a   : > { %1277 = vrot.lane.b32.xlu0 %v1230_v42, %s2314_s9  ;;  %v549_v42 = vrot.slane %v547_v34, 4 }
  0x8b   : > { %v399_v52 = vpop.permute.xlu1 %398  ;;  %v541_v45 = vsel %vm2397_vm5, %v1980_v37, %v540_v23  ;;  %v979_v23 = vrot.slane %v2046_v17, 6 }
  0x8c   : > { %445 = vst.msk [vmem:[#allocation2 + $0x8] sm:$0xf] %vm442_vm7, %v399_v52  ;;  %v395_v57 = vpop.permute.xlu0 %394  ;;  %v551_v48 = vsel %vm2397_vm5, %v549_v42, %v550_v43  ;;  %v2073_v43 = vld [vmem:[%s2380_s28 + $0x64] sm:$0xf] }
  0x8d   : > { %443 = vst.msk [vmem:[#allocation2] sm:$0xf] %vm442_vm7, %v395_v57  ;;  %1283 = vrot.lane.b32.xlu1 %v1240_v47, %s2314_s9  ;;  %v2014_v57 = vld [vmem:[%s2380_s28 + $0x50] sm:$0x1] }
  0x8e   : > { %1281 = vrot.lane.b32.xlu0 %v1237_v53, %s2314_s9  ;;  %v1993_v53 = vld [vmem:[%s2380_s28 + $0x4c] sm:$0xf] }
  0x8f   : > { %v401_v1 = vpop.permute.xlu1 %400 }
  0x90   : > { %446 = vst.msk [vmem:[#allocation2 + $0xc] sm:$0xf] %vm442_vm7, %v401_v1  ;;  %v567_v6 = vpop.permute.xlu0 %566  ;;  %v810_v1 = vrot.slane %v2014_v57, 5 }
  0x91   : > { %615 = vst.msk [vmem:[#allocation2] sm:$0xf] %vm614_vm8, %v567_v6  ;;  %1448 = vrot.lane.b32.xlu1 %v1402_v59, %s2315_s10  ;;  %v2045_v6 = vld [vmem:[%s2380_s28 + $0x4c] sm:$0xf] }
  0x92   : > { %1446 = vrot.lane.b32.xlu0 %v1399_v2, %s2315_s10  ;;  %v814_v2 = vrot.slane %v2016_v58, 5  ;;  %v811_v9 = vsel %vm2382_vm2, %v809_v63, %v810_v1 }
  0x93   : > { %v569_v12 = vpop.permute.xlu1 %568 }
  0x94   : > { %v571_v18 = vpop.permute.xlu0 %570  ;;  %v816_v10 = vrot.slane %v814_v2, 4 }
  0x95   : > { %617 = vst.msk [vmem:[#allocation2 + $0x8] sm:$0xf] %vm614_vm8, %v571_v18  ;;  %412 = vrot.lane.b32.xlu1 %v372_v8, %s2308_s29  ;;  %v2015_v8 = vld [vmem:[%s2380_s28 + $0x54] sm:$0xe]  ;;  %v2048_v18 = vld [vmem:[%s2380_s28 + $0x58] sm:$0xf] }
  0x96   : > { %410 = vrot.lane.b32.xlu0 %v369_v13, %s2308_s29  ;;  %v2029_v16 = vrot.slane %v2015_v8, 9  ;;  %v818_v21 = vsel %vm2382_vm2, %v816_v10, %v817_v11  ;;  %v267_v8 = vld [vmem:[%s2380_s28 + $0x4c] sm:$0xf]  ;;  %v2124_v11 = vld [vmem:[%s2380_s28 + $0x60] sm:$0xc] }
  0x97   : > { %v573_v24 = vpop.permute.xlu1 %572  ;;  %284 = vst.msk [vmem:[#allocation2 + $0x34] sm:$0xf] %vm270_vm6, %v267_v8 }
  0x98   : > { %618 = vst.msk [vmem:[#allocation2 + $0xc] sm:$0xf] %vm614_vm8, %v573_v24  ;;  %v397_v29 = vpop.permute.xlu0 %396  ;;  %v983_v24 = vrot.slane %v2048_v18, 6  ;;  %v815_v26 = vsel %vm2382_vm2, %v2029_v16, %v814_v2  ;;  %v307_v16 = vld [vmem:[%s2380_s28 + $0x50] sm:$0x1] }
  0x99   : > { %444 = vst.msk [vmem:[#allocation2 + $0x4] sm:$0xf] %vm442_vm7, %v397_v29  ;;  %1452 = vrot.lane.b32.xlu1 %v1409_v20, %s2315_s10  ;;  %v2044_v20 = vld [vmem:[%s2380_s28 + $0x48] sm:$0xc] }
  0x9a   : > { %616 = vst.msk [vmem:[#allocation2 + $0x4] sm:$0xf] %vm614_vm8, %v569_v12  ;;  %1450 = vrot.lane.b32.xlu0 %v1406_v25, %s2315_s10  ;;  %v976_v12 = vrot.slane %v2045_v6, 6  ;;  %v2060_v27 = vrot.slane %v2044_v20, 10  ;;  %v985_v32 = vrot.slane %v983_v24, 4 }
  0x9b   : > { %v667_v35 = vpop.permute.xlu1 %666  ;;  %v305_v18 = vld [vmem:[%s2380_s28 + $0x48] sm:$0xe] }
  0x9c   : > { %714 = vst.msk [vmem:[#allocation2 + $0x4] sm:$0xf] %vm712_vm9, %v667_v35  ;;  %v665_v39 = vpop.permute.xlu0 %664  ;;  %v978_v22 = vrot.slane %v976_v12, 4  ;;  %v977_v35 = vsel %vm2397_vm5, %v2060_v27, %v976_v12  ;;  %v987_v38 = vsel %vm2397_vm5, %v985_v32, %v986_v33 }
  0x9d   : > { %713 = vst.msk [vmem:[#allocation2] sm:$0xf] %vm712_vm9, %v665_v39  ;;  %416 = vrot.lane.b32.xlu1 %v379_v31, %s2308_s29 }
  0x9e   : > { %414 = vrot.lane.b32.xlu0 %v376_v36, %s2308_s29  ;;  %v980_v31 = vsel %vm2397_vm5, %v978_v22, %v979_v23  ;;  %v2061_v36 = vrot.slane %v2047_v30, 10  ;;  %v2128_v22 = vld [vmem:[%s2380_s28 + $0x70] sm:$0xf] }
  0x9f   : > { %v671_v44 = vpop.permute.xlu1 %670  ;;  %v1419_v30 = vrot.slane %v2128_v22, 6 }
  0xa0   : > { %716 = vst.msk [vmem:[#allocation2 + $0xc] sm:$0xf] %vm712_vm9, %v671_v44  ;;  %v669_v47 = vpop.permute.xlu0 %668  ;;  %v984_v40 = vsel %vm2397_vm5, %v2061_v36, %v983_v24  ;;  %v268_v36 = vld [vmem:[%s2380_s28 + $0x54] sm:$0xf] }
  0xa1   : > { %715 = vst.msk [vmem:[#allocation2 + $0x8] sm:$0xf] %vm712_vm9, %v669_v47  ;;  %584 = vrot.lane.b32.xlu1 %v544_v41, %s2309_s30  ;;  %v2093_v41 = vld [vmem:[%s2380_s28 + $0x64] sm:$0xf]  ;;  %v2094_v47 = vld [vmem:[%s2380_s28 + $0x68] sm:$0x1] }
  0xa2   : > { %582 = vrot.lane.b32.xlu0 %v541_v45, %s2309_s30  ;;  %v1243_v44 = vrot.slane %v2093_v41, 5  ;;  %v1246_v54 = vrot.slane %v2094_v47, 5  ;;  %285 = vst.msk [vmem:[#allocation2 + $0x38] sm:$0xf] %vm270_vm6, %v268_v36  ;;  %v2023_v36 = vld [vmem:[%s2380_s28 + $0x74] sm:$0x1] }
  0xa3   : > { %v836_v49 = vpop.permute.xlu1 %835 }
  0xa4   : > { %883 = vst.msk [vmem:[#allocation2 + $0x4] sm:$0xf] %vm881_vm10, %v836_v49  ;;  %v834_v52 = vpop.permute.xlu0 %833 }
  0xa5   : > { %882 = vst.msk [vmem:[#allocation2] sm:$0xf] %vm881_vm10, %v834_v52  ;;  %588 = vrot.lane.b32.xlu1 %v551_v48, %s2309_s30  ;;  %v2096_v48 = vld [vmem:[%s2380_s28 + $0x70] sm:$0xf]  ;;  %v2074_v52 = vld [vmem:[%s2380_s28 + $0x6c] sm:$0xf] }
  0xa6   : > { %586 = vrot.lane.b32.xlu0 %v548_v50, %s2309_s30  ;;  %v2092_v50 = vld [vmem:[%s2380_s28 + $0x60] sm:$0xe] }
  0xa7   : > { %v840_v55 = vpop.permute.xlu1 %839  ;;  %v2108_v58 = vrot.slane %v2092_v50, 9 }
  0xa8   : > { %885 = vst.msk [vmem:[#allocation2 + $0xc] sm:$0xf] %vm881_vm10, %v840_v55  ;;  %v838_v59 = vpop.permute.xlu0 %837  ;;  %v2097_v55 = vld [vmem:[%s2380_s28 + $0x74] sm:$0x1] }
  0xa9   : > { %884 = vst.msk [vmem:[#allocation2 + $0x8] sm:$0xf] %vm881_vm10, %v838_v59  ;;  %682 = vrot.lane.b32.xlu1 %v1993_v53, %s2310_s5  ;;  %v1245_v53 = vrot.slane %v1243_v44, 4  ;;  %v2095_v59 = vld [vmem:[%s2380_s28 + $0x6c] sm:$0xe]  ;;  %v1244_v6 = vsel %vm2382_vm2, %v2108_v58, %v1243_v44 }
  0xaa   : > { %680 = vrot.lane.b32.xlu0 %v1992_v56, %s2310_s5  ;;  %v1250_v56 = vrot.slane %v2096_v48, 5  ;;  %v2109_v2 = vrot.slane %v2095_v59, 9  ;;  %v481_v58 = vld [vmem:[%s2380_s28 + $0x58] sm:$0xf] }
  0xab   : > { %v1005_v3 = vpop.permute.xlu1 %1004  ;;  %v1247_v63 = vsel %vm2382_vm2, %v1245_v53, %v1246_v54 }
  0xac   : > { %1052 = vst.msk [vmem:[#allocation2 + $0x4] sm:$0xf] %vm1050_vm11, %v1005_v3  ;;  %v1003_v7 = vpop.permute.xlu0 %1002  ;;  %v1252_v1 = vrot.slane %v1250_v56, 4  ;;  %v2126_v3 = vld [vmem:[%s2380_s28 + $0x68] sm:$0x3]  ;;  %v1251_v20 = vsel %vm2382_vm2, %v2109_v2, %v1250_v56 }
  0xad   : > { %1051 = vst.msk [vmem:[#allocation2] sm:$0xf] %vm1050_vm11, %v1003_v7  ;;  %686 = vrot.lane.b32.xlu1 %v1995_v61, %s2310_s5  ;;  %v306_v7 = vld [vmem:[%s2380_s28 + $0x4c] sm:$0xf]  ;;  %v1415_v12 = vrot.slane %v2126_v3, 6 }
  0xae   : > { %684 = vrot.lane.b32.xlu0 %v1994_v62, %s2310_s5  ;;  %v1253_v62 = vrot.slane %v2097_v55, 5  ;;  %v382_v17 = vrot.slane %v306_v7, 5  ;;  %v480_v7 = vld [vmem:[%s2380_s28 + $0x54] sm:$0xc] }
  0xaf   : > { %v1009_v13 = vpop.permute.xlu1 %1008 }
  0xb0   : > { %1054 = vst.msk [vmem:[#allocation2 + $0xc] sm:$0xf] %vm1050_vm11, %v1009_v13  ;;  %v1007_v19 = vpop.permute.xlu0 %1006  ;;  %v1254_v13 = vsel %vm2382_vm2, %v1252_v1, %v1253_v62  ;;  %v384_v28 = vrot.slane %v382_v17, 4  ;;  %v561_v1 = vrot.slane %v481_v58, 6  ;;  %v2055_v58 = vld [vmem:[%s2380_s28 + $0x74] sm:$0x3] }
  0xb1   : > { %1053 = vst.msk [vmem:[#allocation2 + $0x8] sm:$0xf] %vm1050_vm11, %v1007_v19  ;;  %851 = vrot.lane.b32.xlu1 %v811_v9, %s2311_s6  ;;  %v266_v9 = vld [vmem:[%s2380_s28 + $0x48] sm:$0xf] }
  0xb2   : > { %849 = vrot.lane.b32.xlu0 %v808_v14, %s2311_s6  ;;  %283 = vst.msk [vmem:[#allocation2 + $0x30] sm:$0xf] %vm270_vm6, %v266_v9  ;;  %v1414_v14 = vrot.slane %v1412_v4, 4  ;;  %v563_v9 = vrot.slane %v561_v1, 4 }
  0xb3   : > { %v1103_v25 = vpop.permute.xlu1 %1102 }
  0xb4   : > { %1150 = vst.msk [vmem:[#allocation2 + $0x4] sm:$0xf] %vm1148_vm12, %v1103_v25  ;;  %v1101_v29 = vpop.permute.xlu0 %1100  ;;  %v385_v25 = vrot.slane %v307_v16, 5  ;;  %v1416_v27 = vsel %vm2397_vm5, %v1414_v14, %v1415_v12 }
  0xb5   : > { %1149 = vst.msk [vmem:[#allocation2] sm:$0xf] %vm1148_vm12, %v1101_v29  ;;  %855 = vrot.lane.b32.xlu1 %v818_v21, %s2311_s6  ;;  %v2140_v21 = vrot.slane %v2124_v11, 10  ;;  %v2129_v29 = vld [vmem:[%s2380_s28 + $0x74] sm:$0x3] }
  0xb6   : > { %853 = vrot.lane.b32.xlu0 %v815_v26, %s2311_s6  ;;  %v1974_v26 = vrot.slane %v305_v18, 9 }
  0xb7   : > { %v1107_v34 = vpop.permute.xlu1 %1106  ;;  %v1413_v33 = vsel %vm2397_vm5, %v2140_v21, %v1412_v4  ;;  %v1982_v4 = vrot.slane %v477_v60, 10  ;;  %v1997_v21 = vld [vmem:[%s2380_s28 + $0x64] sm:$0xf]  ;;  %v2053_v60 = vld [vmem:[%s2380_s28 + $0x6c] sm:$0xc] }
  0xb8   : > { %1152 = vst.msk [vmem:[#allocation2 + $0xc] sm:$0xf] %vm1148_vm12, %v1107_v34  ;;  %v1105_v37 = vpop.permute.xlu0 %1104  ;;  %v309_v34 = vld [vmem:[%s2380_s28 + $0x58] sm:$0xf]  ;;  %v383_v44 = vsel %vm2382_vm2, %v1974_v26, %v382_v17  ;;  %v2022_v26 = vld [vmem:[%s2380_s28 + $0x70] sm:$0xf] }
  0xb9   : > { %1151 = vst.msk [vmem:[#allocation2 + $0x8] sm:$0xf] %vm1148_vm12, %v1105_v37  ;;  %1020 = vrot.lane.b32.xlu1 %v980_v31, %s2312_s7  ;;  %v2127_v31 = vld [vmem:[%s2380_s28 + $0x6c] sm:$0xc] }
  0xba   : > { %1018 = vrot.lane.b32.xlu0 %v977_v35, %s2312_s7  ;;  %v269_v35 = vld [vmem:[%s2380_s28 + $0x58] sm:$0xf]  ;;  %v2141_v41 = vrot.slane %v2127_v31, 10 }
  0xbb   : > { %v1272_v39 = vpop.permute.xlu1 %1271  ;;  %286 = vst.msk [vmem:[#allocation2 + $0x3c] sm:$0xf] %vm270_vm6, %v269_v35 }
  0xbc   : > { %1319 = vst.msk [vmem:[#allocation2 + $0x4] sm:$0xf] %vm1317_vm13, %v1272_v39  ;;  %v1270_v42 = vpop.permute.xlu0 %1269  ;;  %v386_v39 = vsel %vm2382_vm2, %v384_v28, %v385_v25  ;;  %v1420_v55 = vsel %vm2397_vm5, %v2141_v41, %v1419_v30  ;;  %v2020_v25 = vld [vmem:[%s2380_s28 + $0x68] sm:$0x1]  ;;  %v2018_v28 = vld [vmem:[%s2380_s28 + $0x60] sm:$0xe] }
  0xbd   : > { %1318 = vst.msk [vmem:[#allocation2] sm:$0xf] %vm1317_vm13, %v1270_v42  ;;  %1024 = vrot.lane.b32.xlu1 %v987_v38, %s2312_s7  ;;  %v1422_v38 = vrot.slane %v2129_v29, 6  ;;  %v389_v42 = vrot.slane %v309_v34, 5  ;;  %v1999_v29 = vld [vmem:[%s2380_s28 + $0x70] sm:$0xf] }
  0xbe   : > { %1022 = vrot.lane.b32.xlu0 %v984_v40, %s2312_s7  ;;  %v1421_v40 = vrot.slane %v1419_v30, 4  ;;  %v1998_v30 = vld [vmem:[%s2380_s28 + $0x6c] sm:$0xf]  ;;  %v2030_v35 = vrot.slane %v2018_v28, 9 }
  0xbf   : > { %v1276_v45 = vpop.permute.xlu1 %1275 }
  0xc0   : > { %1321 = vst.msk [vmem:[#allocation2 + $0xc] sm:$0xf] %vm1317_vm13, %v1276_v45  ;;  %v1274_v49 = vpop.permute.xlu0 %1273  ;;  %v310_v45 = vld [vmem:[%s2380_s28 + $0x5c] sm:$0x1]  ;;  %v1423_v50 = vsel %vm2397_vm5, %v1421_v40, %v1422_v38 }
  0xc1   : > { %1320 = vst.msk [vmem:[#allocation2 + $0x8] sm:$0xf] %vm1317_vm13, %v1274_v49  ;;  %1118 = vrot.lane.b32.xlu1 %v2073_v43, %s2313_s8  ;;  %v308_v49 = vld [vmem:[%s2380_s28 + $0x54] sm:$0xe] }
  0xc2   : > { %1116 = vrot.lane.b32.xlu0 %v2072_v46, %s2313_s8  ;;  %v478_v46 = vld [vmem:[%s2380_s28 + $0x4c] sm:$0xf]  ;;  %v1975_v56 = vrot.slane %v308_v49, 9 }
  0xc3   : > { %v1441_v57 = vpop.permute.xlu1 %1440  ;;  %v554_v53 = vrot.slane %v478_v46, 6 }
  0xc4   : > { %1488 = vst.msk [vmem:[#allocation2 + $0x4] sm:$0xf] %vm1486_vm14, %v1441_v57  ;;  %v1439_v61 = vpop.permute.xlu0 %1438  ;;  %v479_v57 = vld [vmem:[%s2380_s28 + $0x50] sm:$0x3]  ;;  %v390_v3 = vsel %vm2382_vm2, %v1975_v56, %v389_v42 }
  0xc5   : > { %1487 = vst.msk [vmem:[#allocation2] sm:$0xf] %vm1486_vm14, %v1439_v61  ;;  %1122 = vrot.lane.b32.xlu1 %v2075_v51, %s2313_s8  ;;  %v391_v51 = vrot.slane %v389_v42, 4  ;;  %v556_v62 = vrot.slane %v554_v53, 4  ;;  %v555_v12 = vsel %vm2397_vm5, %v1982_v4, %v554_v53  ;;  %v831_v42 = vrot.slane %v2023_v36, 5 }
  0xc6   : > { %1120 = vrot.lane.b32.xlu0 %v2074_v52, %s2313_s8  ;;  %v392_v52 = vrot.slane %v310_v45, 5 }
  0xc7   : > { %v405_v5 = vpop.permute.xlu1 %404 }
  0xc8   : > { %448 = vst.msk [vmem:[#allocation2 + $0x14] sm:$0xf] %vm442_vm7, %v405_v5  ;;  %v403_v10 = vpop.permute.xlu0 %402  ;;  %v393_v61 = vsel %vm2382_vm2, %v391_v51, %v392_v52  ;;  %v482_v5 = vld [vmem:[%s2380_s28 + $0x5c] sm:$0x3] }
  0xc9   : > { %447 = vst.msk [vmem:[#allocation2 + $0x10] sm:$0xf] %vm442_vm7, %v403_v10  ;;  %1287 = vrot.lane.b32.xlu1 %v1247_v63, %s2314_s9  ;;  %v557_v63 = vrot.slane %v479_v57, 6  ;;  %v564_v10 = vrot.slane %v482_v5, 6 }
  0xca   : > { %1285 = vrot.lane.b32.xlu0 %v1244_v6, %s2314_s9 }
  0xcb   : > { %v1445_v19 = vpop.permute.xlu1 %1444  ;;  %v558_v8 = vsel %vm2397_vm5, %v556_v62, %v557_v63  ;;  %v565_v16 = vsel %vm2397_vm5, %v563_v9, %v564_v10  ;;  %v1000_v63 = vrot.slane %v2055_v58, 6  ;;  %v2077_v10 = vld [vmem:[%s2380_s28 + $0x7c] sm:$0xf] }
  0xcc   : > { %1490 = vst.msk [vmem:[#allocation2 + $0xc] sm:$0xf] %vm1486_vm14, %v1445_v19  ;;  %v1443_v23 = vpop.permute.xlu0 %1442  ;;  %v2259_v24 = vld [vmem:[#allocation2] sm:$0xff]  }
  0xcd   : > { %1489 = vst.msk [vmem:[#allocation2 + $0x8] sm:$0xf] %vm1486_vm14, %v1443_v23  ;;  %1291 = vrot.lane.b32.xlu1 %v1254_v13, %s2314_s9  ;;  %2183 = vmatprep.mubr.msk.bf16.mxu0 %vm1586_vm15, %v2259_v24  ;;  %v1983_v13 = vrot.slane %v480_v7, 10  ;;  %v2019_v19 = vld [vmem:[%s2380_s28 + $0x64] sm:$0xf] }
  0xce   : > { %1289 = vrot.lane.b32.xlu0 %v1251_v20, %s2314_s9  ;;  %v821_v22 = vrot.slane %v2019_v19, 5  ;;  %v1996_v24 = vld [vmem:[%s2380_s28 + $0x60] sm:$0xf]  ;;  %v2079_v19 = vld [vmem:[%s2380_s28 + $0x88] sm:$0xf] }
  0xcf   : > { %v409_v32 = vpop.permute.xlu1 %408  ;;  %v562_v18 = vsel %vm2397_vm5, %v1983_v13, %v561_v1  ;;  %v2076_v13 = vld [vmem:[%s2380_s28 + $0x78] sm:$0xf] }
  0xd0   : > { %450 = vst.msk [vmem:[#allocation2 + $0x1c] sm:$0xf] %vm442_vm7, %v409_v32  ;;  %v407_v37 = vpop.permute.xlu0 %406  ;;  %v823_v31 = vrot.slane %v821_v22, 4  ;;  %v824_v32 = vrot.slane %v2020_v25, 5  ;;  %v822_v45 = vsel %vm2382_vm2, %v2030_v35, %v821_v22 }
  0xd1   : > { %449 = vst.msk [vmem:[#allocation2 + $0x18] sm:$0xf] %vm442_vm7, %v407_v37  ;;  %1456 = vrot.lane.b32.xlu1 %v1416_v27, %s2315_s10  ;;  %v2051_v37 = vld [vmem:[%s2380_s28 + $0x64] sm:$0xf] }
  0xd2   : > { %1454 = vrot.lane.b32.xlu0 %v1413_v33, %s2315_s10  ;;  %v828_v33 = vrot.slane %v2022_v26, 5  ;;  %v825_v40 = vsel %vm2382_vm2, %v823_v31, %v824_v32  ;;  %v2103_v26 = vld [vmem:[%s2380_s28 + $0x8c] sm:$0x1] }
  0xd3   : > { %v577_v43 = vpop.permute.xlu1 %576  ;;  %v1267_v32 = vrot.slane %v2103_v26, 5 }
  0xd4   : > { %620 = vst.msk [vmem:[#allocation2 + $0x14] sm:$0xf] %vm614_vm8, %v577_v43  ;;  %v575_v47 = vpop.permute.xlu0 %574  ;;  %v2261_v48 = vld [vmem:[#allocation2 + $0x8] sm:$0xff]   ;;  %v830_v41 = vrot.slane %v828_v33, 4  ;;  %v990_v43 = vrot.slane %v2051_v37, 6 }
  0xd5   : > { %619 = vst.msk [vmem:[#allocation2 + $0x10] sm:$0xf] %vm614_vm8, %v575_v47  ;;  %420 = vrot.lane.b32.xlu1 %v386_v39, %s2308_s29  ;;  %2184 = vmatmul.mubr.msk.bf16.vlgmr.msra.gmra.mxu0 %vm1586_vm15, %v2261_v48  ;;  %v2021_v39 = vld [vmem:[%s2380_s28 + $0x6c] sm:$0xe]  ;;  %v2052_v47 = vld [vmem:[%s2380_s28 + $0x68] sm:$0x3] }
  0xd6   : > { %418 = vrot.lane.b32.xlu0 %v383_v44, %s2308_s29  ;;  %v2031_v46 = vrot.slane %v2021_v39, 9  ;;  %v2054_v48 = vld [vmem:[%s2380_s28 + $0x70] sm:$0xf]  ;;  %v832_v51 = vsel %vm2382_vm2, %v830_v41, %v831_v42  ;;  %v992_v52 = vrot.slane %v990_v43, 4  ;;  %v993_v53 = vrot.slane %v2052_v47, 6 }
  0xd7   : > { %v581_v54 = vpop.permute.xlu1 %580  ;;  %v2132_v37 = vld [vmem:[%s2380_s28 + $0x80] sm:$0x3] }
  0xd8   : > { %622 = vst.msk [vmem:[#allocation2 + $0x1c] sm:$0xf] %vm614_vm8, %v581_v54  ;;  %v579_v59 = vpop.permute.xlu0 %578  ;;  %v997_v54 = vrot.slane %v2054_v48, 6  ;;  %v829_v56 = vsel %vm2382_vm2, %v2031_v46, %v828_v33  ;;  %v2135_v48 = vld [vmem:[%s2380_s28 + $0x8c] sm:$0x3] }
  0xd9   : > { %621 = vst.msk [vmem:[#allocation2 + $0x18] sm:$0xf] %vm614_vm8, %v579_v59  ;;  %1460 = vrot.lane.b32.xlu1 %v1423_v50, %s2315_s10  ;;  %v2050_v50 = vld [vmem:[%s2380_s28 + $0x60] sm:$0xc] }
  0xda   : > { %1458 = vrot.lane.b32.xlu0 %v1420_v55, %s2315_s10  ;;  %v2062_v57 = vrot.slane %v2050_v50, 10  ;;  %v999_v62 = vrot.slane %v997_v54, 4 }
  0xdb   : > { %v675_v2 = vpop.permute.xlu1 %674 }
  0xdc   : > { %718 = vst.msk [vmem:[#allocation2 + $0x14] sm:$0xf] %vm712_vm9, %v675_v2  ;;  %v673_v6 = vpop.permute.xlu0 %672  ;;  %v991_v2 = vsel %vm2397_vm5, %v2062_v57, %v990_v43  ;;  %v1001_v5 = vsel %vm2397_vm5, %v999_v62, %v1000_v63  ;;  %v1429_v43 = vrot.slane %v2132_v37, 6 }
  0xdd   : > { %717 = vst.msk [vmem:[#allocation2 + $0x10] sm:$0xf] %vm712_vm9, %v673_v6  ;;  %424 = vrot.lane.b32.xlu1 %v393_v61, %s2308_s29  ;;  %v994_v61 = vsel %vm2397_vm5, %v992_v52, %v993_v53  ;;  %v1436_v53 = vrot.slane %v2135_v48, 6 }
  0xde   : > { %422 = vrot.lane.b32.xlu0 %v390_v3, %s2308_s29  ;;  %v2063_v3 = vrot.slane %v2053_v60, 10 }
  0xdf   : > { %v679_v11 = vpop.permute.xlu1 %678 }
  0xe0   : > { %720 = vst.msk [vmem:[#allocation2 + $0x1c] sm:$0xf] %vm712_vm9, %v679_v11  ;;  %v677_v14 = vpop.permute.xlu0 %676  ;;  %v998_v7 = vsel %vm2397_vm5, %v2063_v3, %v997_v54 }
  0xe1   : > { %719 = vst.msk [vmem:[#allocation2 + $0x18] sm:$0xf] %vm712_vm9, %v677_v14  ;;  %592 = vrot.lane.b32.xlu1 %v558_v8, %s2309_s30  ;;  %v2099_v8 = vld [vmem:[%s2380_s28 + $0x7c] sm:$0xf]  ;;  %v2100_v14 = vld [vmem:[%s2380_s28 + $0x80] sm:$0x1] }
  0xe2   : > { %590 = vrot.lane.b32.xlu0 %v555_v12, %s2309_s30  ;;  %v1257_v11 = vrot.slane %v2099_v8, 5  ;;  %v1260_v22 = vrot.slane %v2100_v14, 5 }
  0xe3   : > { %v844_v17 = vpop.permute.xlu1 %843 }
  0xe4   : > { %887 = vst.msk [vmem:[#allocation2 + $0x14] sm:$0xf] %vm881_vm10, %v844_v17  ;;  %v842_v20 = vpop.permute.xlu0 %841 }
  0xe5   : > { %886 = vst.msk [vmem:[#allocation2 + $0x10] sm:$0xf] %vm881_vm10, %v842_v20  ;;  %596 = vrot.lane.b32.xlu1 %v565_v16, %s2309_s30  ;;  %v2102_v16 = vld [vmem:[%s2380_s28 + $0x88] sm:$0xf]  ;;  %v2078_v20 = vld [vmem:[%s2380_s28 + $0x84] sm:$0xf] }
  0xe6   : > { %594 = vrot.lane.b32.xlu0 %v562_v18, %s2309_s30  ;;  %v2098_v18 = vld [vmem:[%s2380_s28 + $0x78] sm:$0xe] }
  0xe7   : > { %v848_v23 = vpop.permute.xlu1 %847  ;;  %v2110_v25 = vrot.slane %v2098_v18, 9 }
  0xe8   : > { %889 = vst.msk [vmem:[#allocation2 + $0x1c] sm:$0xf] %vm881_vm10, %v848_v23  ;;  %v846_v27 = vpop.permute.xlu0 %845  ;;  %v1264_v23 = vrot.slane %v2102_v16, 5 }
  0xe9   : > { %888 = vst.msk [vmem:[#allocation2 + $0x18] sm:$0xf] %vm881_vm10, %v846_v27  ;;  %690 = vrot.lane.b32.xlu1 %v1997_v21, %s2310_s5  ;;  %v1259_v21 = vrot.slane %v1257_v11, 4  ;;  %v2131_v27 = vld [vmem:[%s2380_s28 + $0x7c] sm:$0xf]  ;;  %v1258_v35 = vsel %vm2382_vm2, %v2110_v25, %v1257_v11 }
  0xea   : > { %688 = vrot.lane.b32.xlu0 %v1996_v24, %s2310_s5  ;;  %v1266_v31 = vrot.slane %v1264_v23, 4  ;;  %v1426_v33 = vrot.slane %v2131_v27, 6 }
  0xeb   : > { %v1013_v34 = vpop.permute.xlu1 %1012 }
  0xec   : > { %1056 = vst.msk [vmem:[#allocation2 + $0x14] sm:$0xf] %vm1050_vm11, %v1013_v34  ;;  %v1011_v38 = vpop.permute.xlu0 %1010  ;;  %v1268_v41 = vsel %vm2382_vm2, %v1266_v31, %v1267_v32  ;;  %v1428_v42 = vrot.slane %v1426_v33, 4 }
  0xed   : > { %1055 = vst.msk [vmem:[#allocation2 + $0x10] sm:$0xf] %vm1050_vm11, %v1011_v38  ;;  %694 = vrot.lane.b32.xlu1 %v1999_v29, %s2310_s5  ;;  %v2101_v29 = vld [vmem:[%s2380_s28 + $0x84] sm:$0xe]  ;;  %v2134_v38 = vld [vmem:[%s2380_s28 + $0x88] sm:$0xf] }
  0xee   : > { %692 = vrot.lane.b32.xlu0 %v1998_v30, %s2310_s5  ;;  %v1261_v30 = vsel %vm2382_vm2, %v1259_v21, %v1260_v22  ;;  %v2111_v36 = vrot.slane %v2101_v29, 9  ;;  %v1430_v52 = vsel %vm2397_vm5, %v1428_v42, %v1429_v43 }
  0xef   : > { %v1017_v44 = vpop.permute.xlu1 %1016 }
  0xf0   : > { %1058 = vst.msk [vmem:[#allocation2 + $0x1c] sm:$0xf] %vm1050_vm11, %v1017_v44  ;;  %v1015_v49 = vpop.permute.xlu0 %1014  ;;  %v1433_v44 = vrot.slane %v2134_v38, 6  ;;  %v1265_v46 = vsel %vm2382_vm2, %v2111_v36, %v1264_v23 }
  0xf1   : > { %1057 = vst.msk [vmem:[#allocation2 + $0x18] sm:$0xf] %vm1050_vm11, %v1015_v49  ;;  %859 = vrot.lane.b32.xlu1 %v825_v40, %s2311_s6  ;;  %v2130_v40 = vld [vmem:[%s2380_s28 + $0x78] sm:$0xc] }
  0xf2   : > { %857 = vrot.lane.b32.xlu0 %v822_v45, %s2311_s6  ;;  %v2142_v47 = vrot.slane %v2130_v40, 10  ;;  %v1435_v0 = vrot.slane %v1433_v44, 4 }
  0xf3   : > { %v1111_v55 = vpop.permute.xlu1 %1110 }
  0xf4   : > { %1154 = vst.msk [vmem:[#allocation2 + $0x14] sm:$0xf] %vm1148_vm12, %v1111_v55  ;;  %v1109_v59 = vpop.permute.xlu0 %1108  ;;  %v1427_v55 = vsel %vm2397_vm5, %v2142_v47, %v1426_v33  ;;  %v1437_v58 = vsel %vm2397_vm5, %v1435_v0, %v1436_v53 }
  0xf5   : > { %1153 = vst.msk [vmem:[#allocation2 + $0x10] sm:$0xf] %vm1148_vm12, %v1109_v59  ;;  %863 = vrot.lane.b32.xlu1 %v832_v51, %s2311_s6  ;;  %v2133_v51 = vld [vmem:[%s2380_s28 + $0x84] sm:$0xc]  ;;  %s1967_s28 = sshll.u32 %s242_s27, 1 }
  0xf6   : > { %861 = vrot.lane.b32.xlu0 %v829_v56, %s2311_s6  ;;  %v2143_v56 = vrot.slane %v2133_v51, 10  ;;  %s252_s5 = scalar_lea.vmem %s3116_s4, %s1967_s28  ;;  %s1965_s6 = sshll.u32 %s242_s27, 3 }
  0xf7   : > { %v1115_v1 = vpop.permute.xlu1 %1114  ;;  %s244_s15 = scalar_lea.vmem %s3115_s3, %s1965_s6 }
  0xf8   : > { %1156 = vst.msk [vmem:[#allocation2 + $0x1c] sm:$0xf] %vm1148_vm12, %v1115_v1  ;;  %v1113_v4 = vpop.permute.xlu0 %1112  ;;  %v1434_v60 = vsel %vm2397_vm5, %v2143_v56, %v1433_v44 }
  0xf9   : > { %1155 = vst.msk [vmem:[#allocation2 + $0x18] sm:$0xf] %vm1148_vm12, %v1113_v4  ;;  %1028 = vrot.lane.b32.xlu1 %v994_v61, %s2312_s7 }
  0xfa   : > { %1026 = vrot.lane.b32.xlu0 %v991_v2, %s2312_s7 }
  0xfb   : > { %v1280_v6 = vpop.permute.xlu1 %1279 }
  0xfc   : > { %1323 = vst.msk [vmem:[#allocation2 + $0x14] sm:$0xf] %vm1317_vm13, %v1280_v6  ;;  %v1278_v9 = vpop.permute.xlu0 %1277 }
  0xfd   : > { %1322 = vst.msk [vmem:[#allocation2 + $0x10] sm:$0xf] %vm1317_vm13, %v1278_v9  ;;  %1032 = vrot.lane.b32.xlu1 %v1001_v5, %s2312_s7 }
  0xfe   : > { %1030 = vrot.lane.b32.xlu0 %v998_v7, %s2312_s7 }
  0xff   : > { %v1284_v12 = vpop.permute.xlu1 %1283 }
 0x100   : > { %1325 = vst.msk [vmem:[#allocation2 + $0x1c] sm:$0xf] %vm1317_vm13, %v1284_v12  ;;  %v1282_v17 = vpop.permute.xlu0 %1281 }
 0x101   : > { %1324 = vst.msk [vmem:[#allocation2 + $0x18] sm:$0xf] %vm1317_vm13, %v1282_v17  ;;  %1126 = vrot.lane.b32.xlu1 %v2077_v10, %s2313_s8 }
 0x102   : > { %1124 = vrot.lane.b32.xlu0 %v2076_v13, %s2313_s8 }
 0x103   : > { %v1449_v24 = vpop.permute.xlu1 %1448 }
 0x104   : > { %1492 = vst.msk [vmem:[#allocation2 + $0x14] sm:$0xf] %vm1486_vm14, %v1449_v24  ;;  %v1447_v28 = vpop.permute.xlu0 %1446 }
 0x105   : > { %1491 = vst.msk [vmem:[#allocation2 + $0x10] sm:$0xf] %vm1486_vm14, %v1447_v28  ;;  %1130 = vrot.lane.b32.xlu1 %v2079_v19, %s2313_s8 }
 0x106   : > { %1128 = vrot.lane.b32.xlu0 %v2078_v20, %s2313_s8 }
 0x107   : > { %v413_v34 = vpop.permute.xlu1 %412 }
 0x108   : > { %452 = vst.msk [vmem:[#allocation2 + $0x24] sm:$0xf] %vm442_vm7, %v413_v34  ;;  %v411_v39 = vpop.permute.xlu0 %410 }
 0x109   : > { %451 = vst.msk [vmem:[#allocation2 + $0x20] sm:$0xf] %vm442_vm7, %v411_v39  ;;  %1295 = vrot.lane.b32.xlu1 %v1261_v30, %s2314_s9 }
 0x10a   : > { %1293 = vrot.lane.b32.xlu0 %v1258_v35, %s2314_s9 }
 0x10b   : > { %v1453_v45 = vpop.permute.xlu1 %1452 }
 0x10c   : > { %1494 = vst.msk [vmem:[#allocation2 + $0x1c] sm:$0xf] %vm1486_vm14, %v1453_v45  ;;  %v1451_v49 = vpop.permute.xlu0 %1450  ;;  %v2262_v50 = vld [vmem:[#allocation2 + $0x10] sm:$0xff]  }
 0x10d   : > { %1493 = vst.msk [vmem:[#allocation2 + $0x18] sm:$0xf] %vm1486_vm14, %v1451_v49  ;;  %1299 = vrot.lane.b32.xlu1 %v1268_v41, %s2314_s9  ;;  %2187 = vmatprep.mubr.msk.bf16.mxu0 %vm1586_vm15, %v2262_v50 }
 0x10e   : > { %1297 = vrot.lane.b32.xlu0 %v1265_v46, %s2314_s9 }
 0x10f   : > { %v417_v54 = vpop.permute.xlu1 %416 }
 0x110   : > { %454 = vst.msk [vmem:[#allocation2 + $0x2c] sm:$0xf] %vm442_vm7, %v417_v54  ;;  %v415_v57 = vpop.permute.xlu0 %414 }
 0x111   : > { %453 = vst.msk [vmem:[#allocation2 + $0x28] sm:$0xf] %vm442_vm7, %v415_v57  ;;  %1464 = vrot.lane.b32.xlu1 %v1430_v52, %s2315_s10 }
 0x112   : > { %1462 = vrot.lane.b32.xlu0 %v1427_v55, %s2315_s10 }
 0x113   : > { %v585_v59 = vpop.permute.xlu1 %584 }
 0x114   : > { %624 = vst.msk [vmem:[#allocation2 + $0x24] sm:$0xf] %vm614_vm8, %v585_v59  ;;  %v583_v61 = vpop.permute.xlu0 %582  ;;  %v2263_v62 = vld [vmem:[#allocation2 + $0x18] sm:$0xff]  }
 0x115   : > { %623 = vst.msk [vmem:[#allocation2 + $0x20] sm:$0xf] %vm614_vm8, %v583_v61  ;;  %1468 = vrot.lane.b32.xlu1 %v1437_v58, %s2315_s10  ;;  %2188 = vmatmul.mubr.msk.bf16.gmra.mxu0 %vm1586_vm15, %v2263_v62  ;;  %v3071_v62 = vld [vmem:[%s3114_s2] ss:$0 sm:$0xff] }
 0x116   : > { %1466 = vrot.lane.b32.xlu0 %v1434_v60, %s2315_s10 }
 0x117   : > { %v589_v63 = vpop.permute.xlu1 %588 }
 0x118   : > { %626 = vst.msk [vmem:[#allocation2 + $0x2c] sm:$0xf] %vm614_vm8, %v589_v63  ;;  %v587_v1 = vpop.permute.xlu0 %586 }
 0x119   : > { %625 = vst.msk [vmem:[#allocation2 + $0x28] sm:$0xf] %vm614_vm8, %v587_v1 }
 0x11b   : > { %v683_v15 = vpop.permute.xlu1 %682 }
 0x11c   : > { %722 = vst.msk [vmem:[#allocation2 + $0x24] sm:$0xf] %vm712_vm9, %v683_v15  ;;  %v681_v2 = vpop.permute.xlu0 %680 }
 0x11d   : > { %721 = vst.msk [vmem:[#allocation2 + $0x20] sm:$0xf] %vm712_vm9, %v681_v2 }
 0x11f   : > { %v687_v3 = vpop.permute.xlu1 %686 }
 0x120   : > { %724 = vst.msk [vmem:[#allocation2 + $0x2c] sm:$0xf] %vm712_vm9, %v687_v3  ;;  %v685_v4 = vpop.permute.xlu0 %684 }
 0x121   : > { %723 = vst.msk [vmem:[#allocation2 + $0x28] sm:$0xf] %vm712_vm9, %v685_v4 }
 0x123   : > { %v852_v5 = vpop.permute.xlu1 %851 }
 0x124   : > { %891 = vst.msk [vmem:[#allocation2 + $0x24] sm:$0xf] %vm881_vm10, %v852_v5  ;;  %v850_v6 = vpop.permute.xlu0 %849 }
 0x125   : > { %890 = vst.msk [vmem:[#allocation2 + $0x20] sm:$0xf] %vm881_vm10, %v850_v6 }
 0x127   : > { %v856_v7 = vpop.permute.xlu1 %855 }
 0x128   : > { %893 = vst.msk [vmem:[#allocation2 + $0x2c] sm:$0xf] %vm881_vm10, %v856_v7  ;;  %v854_v8 = vpop.permute.xlu0 %853 }
 0x129   : > { %892 = vst.msk [vmem:[#allocation2 + $0x28] sm:$0xf] %vm881_vm10, %v854_v8 }
 0x12b   : > { %v1021_v9 = vpop.permute.xlu1 %1020 }
 0x12c   : > { %1060 = vst.msk [vmem:[#allocation2 + $0x24] sm:$0xf] %vm1050_vm11, %v1021_v9  ;;  %v1019_v10 = vpop.permute.xlu0 %1018 }
 0x12d   : > { %1059 = vst.msk [vmem:[#allocation2 + $0x20] sm:$0xf] %vm1050_vm11, %v1019_v10 }
 0x12f   : > { %v1025_v11 = vpop.permute.xlu1 %1024 }
 0x130   : > { %1062 = vst.msk [vmem:[#allocation2 + $0x2c] sm:$0xf] %vm1050_vm11, %v1025_v11  ;;  %v1023_v12 = vpop.permute.xlu0 %1022 }
 0x131   : > { %1061 = vst.msk [vmem:[#allocation2 + $0x28] sm:$0xf] %vm1050_vm11, %v1023_v12 }
 0x133   : > { %v1119_v13 = vpop.permute.xlu1 %1118 }
 0x134   : > { %1158 = vst.msk [vmem:[#allocation2 + $0x24] sm:$0xf] %vm1148_vm12, %v1119_v13  ;;  %v1117_v14 = vpop.permute.xlu0 %1116 }
 0x135   : > { %1157 = vst.msk [vmem:[#allocation2 + $0x20] sm:$0xf] %vm1148_vm12, %v1117_v14 }
 0x137   : > { %v1123_v16 = vpop.permute.xlu1 %1122 }
 0x138   : > { %1160 = vst.msk [vmem:[#allocation2 + $0x2c] sm:$0xf] %vm1148_vm12, %v1123_v16  ;;  %v1121_v17 = vpop.permute.xlu0 %1120 }
 0x139   : > { %1159 = vst.msk [vmem:[#allocation2 + $0x28] sm:$0xf] %vm1148_vm12, %v1121_v17 }
 0x13b   : > { %v1288_v18 = vpop.permute.xlu1 %1287 }
 0x13c   : > { %1327 = vst.msk [vmem:[#allocation2 + $0x24] sm:$0xf] %vm1317_vm13, %v1288_v18  ;;  %v1286_v19 = vpop.permute.xlu0 %1285 }
 0x13d   : > { %1326 = vst.msk [vmem:[#allocation2 + $0x20] sm:$0xf] %vm1317_vm13, %v1286_v19 }
 0x13f   : > { %v1292_v20 = vpop.permute.xlu1 %1291 }
 0x140   : > { %1329 = vst.msk [vmem:[#allocation2 + $0x2c] sm:$0xf] %vm1317_vm13, %v1292_v20  ;;  %v1290_v21 = vpop.permute.xlu0 %1289 }
 0x141   : > { %1328 = vst.msk [vmem:[#allocation2 + $0x28] sm:$0xf] %vm1317_vm13, %v1290_v21 }
 0x143   : > { %v1457_v22 = vpop.permute.xlu1 %1456 }
 0x144   : > { %1496 = vst.msk [vmem:[#allocation2 + $0x24] sm:$0xf] %vm1486_vm14, %v1457_v22  ;;  %v1455_v23 = vpop.permute.xlu0 %1454 }
 0x145   : > { %1495 = vst.msk [vmem:[#allocation2 + $0x20] sm:$0xf] %vm1486_vm14, %v1455_v23 }
 0x147   : > { %v421_v24 = vpop.permute.xlu1 %420 }
 0x148   : > { %456 = vst.msk [vmem:[#allocation2 + $0x34] sm:$0xf] %vm442_vm7, %v421_v24  ;;  %v419_v25 = vpop.permute.xlu0 %418 }
 0x149   : > { %455 = vst.msk [vmem:[#allocation2 + $0x30] sm:$0xf] %vm442_vm7, %v419_v25 }
 0x14b   : > { %v1461_v26 = vpop.permute.xlu1 %1460 }
 0x14c   : > { %1498 = vst.msk [vmem:[#allocation2 + $0x2c] sm:$0xf] %vm1486_vm14, %v1461_v26  ;;  %v1459_v27 = vpop.permute.xlu0 %1458  ;;  %v2264_v28 = vld [vmem:[#allocation2 + $0x20] sm:$0xff]  }
 0x14d   : > { %1497 = vst.msk [vmem:[#allocation2 + $0x28] sm:$0xf] %vm1486_vm14, %v1459_v27  ;;  %2191 = vmatprep.mubr.msk.bf16.mxu1 %vm1586_vm15, %v2264_v28 }
 0x14f   : > { %v425_v29 = vpop.permute.xlu1 %424 }
 0x150   : > { %458 = vst.msk [vmem:[#allocation2 + $0x3c] sm:$0xf] %vm442_vm7, %v425_v29  ;;  %v423_v30 = vpop.permute.xlu0 %422 }
 0x151   : > { %457 = vst.msk [vmem:[#allocation2 + $0x38] sm:$0xf] %vm442_vm7, %v423_v30 }
 0x153   : > { %v593_v31 = vpop.permute.xlu1 %592 }
 0x154   : > { %628 = vst.msk [vmem:[#allocation2 + $0x34] sm:$0xf] %vm614_vm8, %v593_v31  ;;  %v591_v32 = vpop.permute.xlu0 %590  ;;  %v2265_v33 = vld [vmem:[#allocation2 + $0x28] sm:$0xff]  }
 0x155   : > { %627 = vst.msk [vmem:[#allocation2 + $0x30] sm:$0xf] %vm614_vm8, %v591_v32  ;;  %2192 = vmatmul.mubr.msk.bf16.vlgmr.msra.gmra.mxu1 %vm1586_vm15, %v2265_v33 }
 0x157   : > { %v597_v34 = vpop.permute.xlu1 %596 }
 0x158   : > { %630 = vst.msk [vmem:[#allocation2 + $0x3c] sm:$0xf] %vm614_vm8, %v597_v34  ;;  %v595_v35 = vpop.permute.xlu0 %594 }
 0x159   : > { %629 = vst.msk [vmem:[#allocation2 + $0x38] sm:$0xf] %vm614_vm8, %v595_v35 }
 0x15b   : > { %v691_v36 = vpop.permute.xlu1 %690 }
 0x15c   : > { %726 = vst.msk [vmem:[#allocation2 + $0x34] sm:$0xf] %vm712_vm9, %v691_v36  ;;  %v689_v37 = vpop.permute.xlu0 %688 }
 0x15d   : > { %725 = vst.msk [vmem:[#allocation2 + $0x30] sm:$0xf] %vm712_vm9, %v689_v37 }
 0x15f   : > { %v695_v38 = vpop.permute.xlu1 %694 }
 0x160   : > { %728 = vst.msk [vmem:[#allocation2 + $0x3c] sm:$0xf] %vm712_vm9, %v695_v38  ;;  %v693_v39 = vpop.permute.xlu0 %692 }
 0x161   : > { %727 = vst.msk [vmem:[#allocation2 + $0x38] sm:$0xf] %vm712_vm9, %v693_v39 }
 0x163   : > { %v860_v40 = vpop.permute.xlu1 %859 }
 0x164   : > { %895 = vst.msk [vmem:[#allocation2 + $0x34] sm:$0xf] %vm881_vm10, %v860_v40  ;;  %v858_v41 = vpop.permute.xlu0 %857 }
 0x165   : > { %894 = vst.msk [vmem:[#allocation2 + $0x30] sm:$0xf] %vm881_vm10, %v858_v41 }
 0x167   : > { %v864_v42 = vpop.permute.xlu1 %863 }
 0x168   : > { %897 = vst.msk [vmem:[#allocation2 + $0x3c] sm:$0xf] %vm881_vm10, %v864_v42  ;;  %v862_v43 = vpop.permute.xlu0 %861 }
 0x169   : > { %896 = vst.msk [vmem:[#allocation2 + $0x38] sm:$0xf] %vm881_vm10, %v862_v43 }
 0x16b   : > { %v1029_v44 = vpop.permute.xlu1 %1028 }
 0x16c   : > { %1064 = vst.msk [vmem:[#allocation2 + $0x34] sm:$0xf] %vm1050_vm11, %v1029_v44  ;;  %v1027_v45 = vpop.permute.xlu0 %1026 }
 0x16d   : > { %1063 = vst.msk [vmem:[#allocation2 + $0x30] sm:$0xf] %vm1050_vm11, %v1027_v45 }
 0x16f   : > { %v1033_v46 = vpop.permute.xlu1 %1032 }
 0x170   : > { %1066 = vst.msk [vmem:[#allocation2 + $0x3c] sm:$0xf] %vm1050_vm11, %v1033_v46  ;;  %v1031_v47 = vpop.permute.xlu0 %1030 }
 0x171   : > { %1065 = vst.msk [vmem:[#allocation2 + $0x38] sm:$0xf] %vm1050_vm11, %v1031_v47 }
 0x173   : > { %v1127_v48 = vpop.permute.xlu1 %1126 }
 0x174   : > { %1162 = vst.msk [vmem:[#allocation2 + $0x34] sm:$0xf] %vm1148_vm12, %v1127_v48  ;;  %v1125_v49 = vpop.permute.xlu0 %1124 }
 0x175   : > { %1161 = vst.msk [vmem:[#allocation2 + $0x30] sm:$0xf] %vm1148_vm12, %v1125_v49 }
 0x177   : > { %v1131_v50 = vpop.permute.xlu1 %1130 }
 0x178   : > { %1164 = vst.msk [vmem:[#allocation2 + $0x3c] sm:$0xf] %vm1148_vm12, %v1131_v50  ;;  %v1129_v51 = vpop.permute.xlu0 %1128 }
 0x179   : > { %1163 = vst.msk [vmem:[#allocation2 + $0x38] sm:$0xf] %vm1148_vm12, %v1129_v51 }
 0x17b   : > { %v1296_v52 = vpop.permute.xlu1 %1295 }
 0x17c   : > { %1331 = vst.msk [vmem:[#allocation2 + $0x34] sm:$0xf] %vm1317_vm13, %v1296_v52  ;;  %v1294_v0 = vpop.permute.xlu0 %1293 }
 0x17d   : > { %1330 = vst.msk [vmem:[#allocation2 + $0x30] sm:$0xf] %vm1317_vm13, %v1294_v0 }
 0x17f   : > { %v1300_v53 = vpop.permute.xlu1 %1299 }
 0x180   : > { %1333 = vst.msk [vmem:[#allocation2 + $0x3c] sm:$0xf] %vm1317_vm13, %v1300_v53  ;;  %v1298_v54 = vpop.permute.xlu0 %1297 }
 0x181   : > { %1332 = vst.msk [vmem:[#allocation2 + $0x38] sm:$0xf] %vm1317_vm13, %v1298_v54 }
 0x183   : > { %v1465_v55 = vpop.permute.xlu1 %1464 }
 0x184   : > { %1500 = vst.msk [vmem:[#allocation2 + $0x34] sm:$0xf] %vm1486_vm14, %v1465_v55  ;;  %v1463_v56 = vpop.permute.xlu0 %1462 }
 0x185   : > { %1499 = vst.msk [vmem:[#allocation2 + $0x30] sm:$0xf] %vm1486_vm14, %v1463_v56 }
 0x187   : > { %v1469_v57 = vpop.permute.xlu1 %1468 }
 0x188   : > { %1502 = vst.msk [vmem:[#allocation2 + $0x3c] sm:$0xf] %vm1486_vm14, %v1469_v57  ;;  %v1467_v58 = vpop.permute.xlu0 %1466 }
 0x189   : > { %1501 = vst.msk [vmem:[#allocation2 + $0x38] sm:$0xf] %vm1486_vm14, %v1467_v58 }
 0x18c   : > { %v2266_v59 = vld [vmem:[#allocation2 + $0x30] sm:$0xff]  }
 0x18d   : > { %2195 = vmatprep.mubr.msk.bf16.mxu1 %vm1586_vm15, %v2266_v59 }
 0x190   : > { %v2267_v60 = vld [vmem:[#allocation2 + $0x38] sm:$0xff]  }
 0x191   : > { %2196 = vmatmul.mubr.msk.bf16.gmra.mxu1 %vm1586_vm15, %v2267_v60 }
 0x195   : > { %v2185_v61 = vpop.f32.mrf.mxu0 }
 0x196   : > { %v1658_v2 = vadd.f32 %v2185_v61, %v3071_v62 }
 0x197   : > { %v1649_v63 = vpop.f32.mrf.mxu0 }
 0x198   : > { %v1650_v1 = vadd.f32 %v3071_v62, %v1649_v63  ;;  %v1714_v7 = vmax.f32 %v1658_v2, 0.0 }
 0x199   : > { %v2186_v15 = vpop.f32.mrf.mxu0 }
 0x19a   : > { %v1712_v3 = vmax.f32 %v1650_v1, 0.0  ;;  %v1661_v5 = vadd.f32 %v2186_v15, %v3071_v62  ;;  %v1751_v13 = vmul.f32 %v1714_v7, %v1714_v7 }
 0x19b   : > { %v1652_v4 = vpop.f32.mrf.mxu0 }
 0x19c   : > { %v1653_v6 = vadd.f32 %v3071_v62, %v1652_v4  ;;  %1789 = vxpose.xlu0.b32.start [1/16] (narrow) %v1712_v3, 8  ;;  %v1749_v9 = vmul.f32 %v1712_v3, %v1712_v3  ;;  %v1715_v10 = vmax.f32 %v1661_v5, 0.0 }
 0x19e   : > { %v1713_v8 = vmax.f32 %v1653_v6, 0.0  ;;  %v1752_v17 = vmul.f32 %v1715_v10, %v1715_v10 }
 0x1a0   : > { %v1728_v11 = vadd.f32 %v1713_v8, %v1712_v3  ;;  %v1750_v12 = vmul.f32 %v1713_v8, %v1713_v8  ;;  %1790 = vxpose.xlu0.b32.cont [2/16] (narrow) %v1713_v8, 8 }
 0x1a2   : > { %v1729_v14 = vadd.f32 %v1728_v11, %v1714_v7  ;;  %v1765_v16 = vadd.f32 %v1750_v12, %v1749_v9 }
 0x1a4   : > { %v1766_v18 = vadd.f32 %v1765_v16, %v1751_v13  ;;  %1791 = vxpose.xlu0.b32.cont [3/16] (narrow) %v1714_v7, 8  ;;  %v1730_v19 = vadd.f32 %v1729_v14, %v1715_v10 }
 0x1a6   : > { %v1767_v20 = vadd.f32 %v1766_v18, %v1752_v17 }
 0x1a8   : > { %1792 = vxpose.xlu0.b32.cont [4/16] (narrow) %v1715_v10, 8 }
 0x1d5   : > { %v2189_v21 = vpop.f32.mrf.mxu0 }
 0x1d6   : > { %v1674_v25 = vadd.f32 %v2189_v21, %v3071_v62 }
 0x1d7   : > { %v1665_v22 = vpop.f32.mrf.mxu0 }
 0x1d8   : > { %v1666_v23 = vadd.f32 %v3071_v62, %v1665_v22  ;;  %v1718_v32 = vmax.f32 %v1674_v25, 0.0 }
 0x1d9   : > { %v2190_v24 = vpop.f32.mrf.mxu0 }
 0x1da   : > { %v1716_v26 = vmax.f32 %v1666_v23, 0.0  ;;  %v1677_v30 = vadd.f32 %v2190_v24, %v3071_v62  ;;  %v1755_v38 = vmul.f32 %v1718_v32, %v1718_v32 }
 0x1db   : > { %v1668_v27 = vpop.f32.mrf.mxu0 }
 0x1dc   : > { %v1731_v28 = vadd.f32 %v1730_v19, %v1716_v26  ;;  %v1753_v29 = vmul.f32 %v1716_v26, %v1716_v26  ;;  %v1669_v31 = vadd.f32 %v3071_v62, %v1668_v27  ;;  %1793 = vxpose.xlu0.b32.cont [5/16] (narrow) %v1716_v26, 8  ;;  %v1719_v35 = vmax.f32 %v1677_v30, 0.0 }
 0x1de   : > { %v1768_v33 = vadd.f32 %v1767_v20, %v1753_v29  ;;  %v1717_v34 = vmax.f32 %v1669_v31, 0.0  ;;  %v1756_v41 = vmul.f32 %v1719_v35, %v1719_v35 }
 0x1e0   : > { %v1732_v36 = vadd.f32 %v1731_v28, %v1717_v34  ;;  %v1754_v37 = vmul.f32 %v1717_v34, %v1717_v34  ;;  %1794 = vxpose.xlu0.b32.cont [6/16] (narrow) %v1717_v34, 8 }
 0x1e2   : > { %v1733_v39 = vadd.f32 %v1732_v36, %v1718_v32  ;;  %v1769_v40 = vadd.f32 %v1768_v33, %v1754_v37 }
 0x1e4   : > { %v1770_v42 = vadd.f32 %v1769_v40, %v1755_v38  ;;  %1795 = vxpose.xlu0.b32.cont [7/16] (narrow) %v1718_v32, 8  ;;  %v1734_v43 = vadd.f32 %v1733_v39, %v1719_v35 }
 0x1e6   : > { %v1771_v44 = vadd.f32 %v1770_v42, %v1756_v41 }
 0x1e8   : > { %1796 = vxpose.xlu0.b32.cont [8/16] (narrow) %v1719_v35, 8 }
 0x215   : > { %v2193_v45 = vpop.f32.mrf.mxu1 }
 0x216   : > { %v1690_v52 = vadd.f32 %v2193_v45, %v3071_v62 }
 0x217   : > { %v1681_v46 = vpop.f32.mrf.mxu1 }
 0x218   : > { %v1682_v47 = vadd.f32 %v3071_v62, %v1681_v46  ;;  %v1722_v53 = vmax.f32 %v1690_v52, 0.0 }
 0x219   : > { %v2194_v48 = vpop.f32.mrf.mxu1 }
 0x21a   : > { %v1720_v49 = vmax.f32 %v1682_v47, 0.0  ;;  %v1693_v54 = vadd.f32 %v2194_v48, %v3071_v62  ;;  %v1759_v15 = vmul.f32 %v1722_v53, %v1722_v53 }
 0x21b   : > { %v1684_v50 = vpop.f32.mrf.mxu1 }
 0x21c   : > { %v1685_v51 = vadd.f32 %v3071_v62, %v1684_v50  ;;  %1797 = vxpose.xlu0.b32.cont [9/16] (narrow) %v1720_v49, 8  ;;  %v1723_v55 = vmax.f32 %v1693_v54, 0.0  ;;  %v1757_v56 = vmul.f32 %v1720_v49, %v1720_v49  ;;  %v1735_v57 = vadd.f32 %v1734_v43, %v1720_v49 }
 0x21e   : > { %v1721_v0 = vmax.f32 %v1685_v51, 0.0  ;;  %v1772_v59 = vadd.f32 %v1771_v44, %v1757_v56  ;;  %v1760_v8 = vmul.f32 %v1723_v55, %v1723_v55 }
 0x220   : > { %1798 = vxpose.xlu0.b32.cont [10/16] (narrow) %v1721_v0, 8  ;;  %v1758_v58 = vmul.f32 %v1721_v0, %v1721_v0  ;;  %v1736_v60 = vadd.f32 %v1735_v57, %v1721_v0 }
 0x222   : > { %v1773_v63 = vadd.f32 %v1772_v59, %v1758_v58  ;;  %v1737_v2 = vadd.f32 %v1736_v60, %v1722_v53 }
 0x224   : > { %1799 = vxpose.xlu0.b32.cont [11/16] (narrow) %v1722_v53, 8  ;;  %v1774_v5 = vadd.f32 %v1773_v63, %v1759_v15  ;;  %v1738_v10 = vadd.f32 %v1737_v2, %v1723_v55 }
 0x226   : > { %v1775_v17 = vadd.f32 %v1774_v5, %v1760_v8 }
 0x228   : > { %1800 = vxpose.xlu0.b32.cont [12/16] (narrow) %v1723_v55, 8 }
 0x251   : > { %v2197_v61 = vpop.f32.mrf.mxu1 }
 0x252   : > { %v1706_v6 = vadd.f32 %v2197_v61, %v3071_v62 }
 0x253   : > { %v1697_v1 = vpop.f32.mrf.mxu1 }
 0x254   : > { %v1698_v3 = vadd.f32 %v3071_v62, %v1697_v1  ;;  %v1726_v14 = vmax.f32 %v1706_v6, 0.0 }
 0x255   : > { %v2198_v4 = vpop.f32.mrf.mxu1 }
 0x256   : > { %v1724_v7 = vmax.f32 %v1698_v3, 0.0  ;;  %v1709_v12 = vadd.f32 %v2198_v4, %v3071_v62  ;;  %v1763_v23 = vmul.f32 %v1726_v14, %v1726_v14 }
 0x257   : > { %v1700_v9 = vpop.f32.mrf.mxu1 }
 0x258   : > { %v1761_v11 = vmul.f32 %v1724_v7, %v1724_v7  ;;  %v1701_v13 = vadd.f32 %v3071_v62, %v1700_v9  ;;  %1801 = vxpose.xlu0.b32.cont [13/16] (narrow) %v1724_v7, 8  ;;  %v1739_v16 = vadd.f32 %v1738_v10, %v1724_v7  ;;  %v1727_v20 = vmax.f32 %v1709_v12, 0.0 }
 0x25a   : > { %v1725_v18 = vmax.f32 %v1701_v13, 0.0  ;;  %v1776_v19 = vadd.f32 %v1775_v17, %v1761_v11  ;;  %v1764_v26 = vmul.f32 %v1727_v20, %v1727_v20 }
 0x25c   : > { %v1740_v21 = vadd.f32 %v1739_v16, %v1725_v18  ;;  %v1762_v22 = vmul.f32 %v1725_v18, %v1725_v18  ;;  %1802 = vxpose.xlu0.b32.cont [14/16] (narrow) %v1725_v18, 8 }
 0x25e   : > { %v1741_v24 = vadd.f32 %v1740_v21, %v1726_v14  ;;  %v1777_v25 = vadd.f32 %v1776_v19, %v1762_v22 }
 0x260   : > { %v1742_v27 = vadd.f32 %v1741_v24, %v1727_v20  ;;  %v1778_v28 = vadd.f32 %v1777_v25, %v1763_v23  ;;  %1803 = vxpose.xlu0.b32.cont [15/16] (narrow) %v1726_v14, 8 }
 0x262   : > { %v1743_v62 = vrot.slane %v1742_v27, 4  ;;  %v1779_v29 = vadd.f32 %v1778_v28, %v1764_v26 }
 0x264   : > { %v1744_v30 = vadd.f32 %v1743_v62, %v1742_v27  ;;  %v1780_v31 = vrot.slane %v1779_v29, 4  ;;  %1804 = vxpose.xlu0.b32.end [16/16] (narrow) %v1727_v20, 8 }
 0x266   : > { %v1745_v32 = vrot.slane %v1744_v30, 2  ;;  %v1781_v33 = vadd.f32 %v1780_v31, %v1779_v29 }
 0x268   : > { %v1746_v34 = vadd.f32 %v1745_v32, %v1744_v30  ;;  %v1782_v35 = vrot.slane %v1781_v33, 2 }
 0x26a   : > { %v1747_v36 = vrot.slane %v1746_v34, 1  ;;  %v1783_v37 = vadd.f32 %v1782_v35, %v1781_v33 }
 0x26c   : > { %v1784_v38 = vrot.slane %v1783_v37, 1  ;;  %v1748_v39 = vadd.f32 %v1747_v36, %v1746_v34 }
 0x26e   : > { %v1785_v40 = vadd.f32 %v1784_v38, %v1783_v37 }
 0x270   : > { %v1787_v41 = vsel %vm1786_vm0, %v1748_v39, %v1785_v40 }
 0x271   : > { %1788 = vst [vmem:[%s252_s5] sm:$0x3] %v1787_v41 }
 0x2a4   : > { %v1805_v42 = vpop.trf.xlu0 }
 0x2a5   : > { %1821 = vst [vmem:[%s244_s15] sm:$0xff] %v1805_v42 }
 0x2a6 PF: > { %s15_s19 = sadd.s32 1, %s2306_s19   ;;  %s3121_s15 = smov %s2298_s17 }
 0x2a7   : > { %p12_p7 = scmp.ge.s32.totalorder %s15_s19, 6   ;;  %s3122_s16 = smov %s2302_s18 }
 0x2a8   : > { %s3123_s17 = smov %s3126_s20  ;;  %s3124_s18 = smov %s3130_s21 }
 0x2a9   :  { %14 = sbr.rel (!%p12_p7) target bundleno = 3 (0x3), region = 76 }

</bundles_post_ra>
